<compile_context>
chip_gen: v6e
topology: v6e:2x2x1
jax: 0.10.0
libtpu: 0.0.40
codegen_flags: <defaults>
</compile_context>

<pallas_src>
import functools

import jax
import jax.numpy as jnp
from jax import lax
from jax.experimental import pallas as pl
from jax.experimental.pallas import tpu as pltpu


def _round_up(v, m):
    return (v + m - 1) // m * m


# ---------------------------------------------------------------------------
# Kernel: one image (HW, C_pad) per grid step.
# ---------------------------------------------------------------------------
def _bottleneck_kernel(
    x_ref,
    w1_ref, b1_ref, s1f1_ref, s1f2_ref, s1k_ref,
    w2_ref, b2_ref,
    w3_ref, b3_ref, sf1_ref, sf2_ref, sk_ref,
    out_ref,
    *, H, W,
):
    HW = H * W
    x = x_ref[...]                               # (HW, Cin_p) f32, one image

    def mm(a, w_bf16):
        # bf16 MXU matmul, f32 accumulation.
        return jnp.dot(a.astype(jnp.bfloat16), w_bf16,
                       preferred_element_type=jnp.float32)

    def sea(a, fc1, fc2, K):
        # AdaptiveAvgPool2d(1): per-image/channel spatial mean (XLU reduction).
        y = jnp.mean(a, axis=0, keepdims=True)                       # (1, C)
        # fc: Linear -> ReLU -> Linear -> Sigmoid (tiny; kept in f32).
        y = jnp.dot(y, fc1, preferred_element_type=jnp.float32)
        y = jnp.dot(jnp.maximum(y, 0.0), fc2,
                    preferred_element_type=jnp.float32)
        y = jax.nn.sigmoid(y)
        # Conv1d(1, 1, k=3, pad=1) across channels == banded matmul.
        y = jax.nn.sigmoid(jnp.dot(y, K, preferred_element_type=jnp.float32))
        # x * y.expand_as(x): VPU broadcast over the spatial rows.
        return a * y

    # ---- conv1 (1x1, BN1 scale folded into bf16 weight) + bias + sea1 + relu
    a = mm(x, w1_ref[...]) + b1_ref[...]
    a = jnp.maximum(sea(a, s1f1_ref[...], s1f2_ref[...], s1k_ref[...]), 0.0)

    # ---- conv2 (3x3, stride 1, pad 1): 9 rolled/masked taps + tap matmuls
    C = a.shape[1]
    row = lax.broadcasted_iota(jnp.int32, (HW, C), 0)          # flat index s
    ww = jnp.concatenate(                                      # s % W, no div
        [lax.broadcasted_iota(jnp.int32, (W, C), 0)] * H, axis=0)

    acc = jnp.zeros((HW, C), jnp.float32)
    t = 0
    for dy in (-1, 0, 1):
        for dx in (-1, 0, 1):
            d = dy * W + dx
            if d == 0:
                shifted = a
            else:
                shifted = pltpu.roll(a, (-d) % HW, axis=0)     # out[s] = a[s+d]
                h_ok = (row >= W * max(0, -dy)) & (row < HW - W * max(0, dy))
                w_ok = (ww + dx >= 0) & (ww + dx < W)
                shifted = jnp.where(h_ok & w_ok, shifted, 0.0)
            acc = acc + mm(shifted, w2_ref[t])
            t += 1
    a = acc + b2_ref[...]
    a = jnp.maximum(sea(a, s1f1_ref[...], s1f2_ref[...], s1k_ref[...]), 0.0)

    # ---- conv3 (1x1) + bn3 + sea
    a = mm(a, w3_ref[...]) + b3_ref[...]
    a = sea(a, sf1_ref[...], sf2_ref[...], sk_ref[...])

    # ---- identity shortcut (downsample=None, first=False) + final relu
    out_ref[...] = jnp.maximum(a + x, 0.0)


# ---------------------------------------------------------------------------
# Host-side parameter preparation (fold BN, pad channels, cast to bf16).
# ---------------------------------------------------------------------------
def _banded_k3(k3, C):
    # z[c] = k0*y[c-1] + k1*y[c] + k2*y[c+1]  (zero padded)
    return (k3[0] * jnp.eye(C, k=1) + k3[1] * jnp.eye(C)
            + k3[2] * jnp.eye(C, k=-1)).astype(jnp.float32)


def prepare_kernel_params(p):
    Cin, Cp = p["w1"].shape
    Cout = p["w3"].shape[1]
    Cin_p, Cp_p, Cout_p = (_round_up(c, 128) for c in (Cin, Cp, Cout))

    def pad2(a, r, c):
        a = a.astype(jnp.float32)
        return jnp.pad(a, ((0, r - a.shape[0]), (0, c - a.shape[1])))

    w1 = pad2(p["w1"] * p["bn1_s"], Cin_p, Cp_p).astype(jnp.bfloat16)
    b1 = pad2(p["bn1_b"], 1, Cp_p)
    taps = []
    for kh in range(3):
        for kw in range(3):
            taps.append(pad2(p["w2_oihw"][:, :, kh, kw].T * p["bn2_s"],
                             Cp_p, Cp_p))
    w2 = jnp.stack(taps, axis=0).astype(jnp.bfloat16)
    b2 = pad2(p["bn2_b"], 1, Cp_p)
    w3 = pad2(p["w3"] * p["bn3_s"], Cp_p, Cout_p).astype(jnp.bfloat16)
    b3 = pad2(p["bn3_b"], 1, Cout_p)

    h1 = p["sea1_fc1"].shape[1]
    h2 = p["sea_fc1"].shape[1]
    s1f1 = pad2(p["sea1_fc1"], Cp_p, h1)
    s1f2 = pad2(p["sea1_fc2"], h1, Cp_p)
    s1k = pad2(_banded_k3(p["sea1_k3"], Cp), Cp_p, Cp_p)
    sf1 = pad2(p["sea_fc1"], Cout_p, h2)
    sf2 = pad2(p["sea_fc2"], h2, Cout_p)
    sk = pad2(_banded_k3(p["sea_k3"], Cout), Cout_p, Cout_p)

    return dict(w1=w1, b1=b1, s1f1=s1f1, s1f2=s1f2, s1k=s1k,
                w2=w2, b2=b2, w3=w3, b3=b3, sf1=sf1, sf2=sf2, sk=sk,
                dims=(Cin, Cp, Cout, Cin_p, Cp_p, Cout_p))


# ---------------------------------------------------------------------------
# Wrapper.
# ---------------------------------------------------------------------------
def bottleneck_pallas(x_nchw, kp):
    Cin, Cp, Cout, Cin_p, Cp_p, Cout_p = kp["dims"]
    N, cin_x, H, W = x_nchw.shape
    assert cin_x == Cin and Cin == Cout, "identity shortcut needs inplanes == 4*planes"
    HW = H * W
    h1 = kp["s1f1"].shape[1]
    h2 = kp["sf1"].shape[1]

    x = jnp.transpose(x_nchw, (0, 2, 3, 1)).reshape(N, HW, Cin).astype(jnp.float32)
    x = jnp.pad(x, ((0, 0), (0, 0), (0, Cin_p - Cin)))

    def resident(shape):
        return pl.BlockSpec(shape, lambda *_: (0,) * len(shape))

    in_specs = [
        pl.BlockSpec((None, HW, Cin_p), lambda n: (n, 0, 0)),
        resident((Cin_p, Cp_p)), resident((1, Cp_p)),
        resident((Cp_p, h1)), resident((h1, Cp_p)), resident((Cp_p, Cp_p)),
        resident((9, Cp_p, Cp_p)), resident((1, Cp_p)),
        resident((Cp_p, Cout_p)), resident((1, Cout_p)),
        resident((Cout_p, h2)), resident((h2, Cout_p)), resident((Cout_p, Cout_p)),
    ]
    out_specs = pl.BlockSpec((None, HW, Cout_p), lambda n: (n, 0, 0))

    weight_keys = ("w1", "b1", "s1f1", "s1f2", "s1k", "w2", "b2",
                   "w3", "b3", "sf1", "sf2", "sk")
    flops = 2 * N * HW * (Cin_p * Cp_p + 9 * Cp_p * Cp_p + Cp_p * Cout_p)
    bytes_accessed = 2 * N * HW * Cout_p * 4 + sum(
        int(kp[k].size) * kp[k].dtype.itemsize for k in weight_keys)
    cost = pl.CostEstimate(flops=int(flops),
                           transcendentals=int(6 * N * max(Cp_p, Cout_p)),
                           bytes_accessed=int(bytes_accessed))

    out_p = pl.pallas_call(
        functools.partial(_bottleneck_kernel, H=H, W=W),
        out_shape=jax.ShapeDtypeStruct((N, HW, Cout_p), jnp.float32),
        grid=(N,),
        in_specs=in_specs,
        out_specs=out_specs,
        input_output_aliases={0: 0},            # residual input reuses output HBM buffer
        cost_estimate=cost,
        compiler_params=pltpu.CompilerParams(
            dimension_semantics=("parallel",),  # shard images across TCs (v7x)
            vmem_limit_bytes=32 * 1024 * 1024,  # stays inside v7x's 64 MiB/TC
        ),
    )(x, *[kp[k] for k in weight_keys])

    out = out_p[:, :, :Cout].reshape(N, H, W, Cout)
    return jnp.transpose(out, (0, 3, 1, 2))


# ---------------------------------------------------------------------------
# Parameter init (torch-like, eval-mode BN folded to scale/bias rows).
# ---------------------------------------------------------------------------
def init_params(key, inplanes, planes):
    expansion = 4
    cout = planes * expansion
    h1 = max(planes // 3, 1)     # SEA_Layer(planes, k_size) -> reduction == 3
    h2 = max(cout // 3, 1)
    keys = iter(jax.random.split(key, 32))

    def nrm(shape, scale):
        return (scale * jax.random.normal(next(keys), shape)).astype(jnp.float32)

    def bn_fold(C):
        gamma = 1.0 + 0.1 * jax.random.normal(next(keys), (C,))
        beta = 0.1 * jax.random.normal(next(keys), (C,))
        mean = 0.1 * jax.random.normal(next(keys), (C,))
        var = 1.0 + 0.2 * jax.random.uniform(next(keys), (C,))
        s = gamma / jnp.sqrt(var + 1e-5)
        b = beta - mean * s
        return s.reshape(1, C).astype(jnp.float32), b.reshape(1, C).astype(jnp.float32)

    w1 = nrm((inplanes, planes), 0.2)
    bn1_s, bn1_b = bn_fold(planes)
    w2_oihw = nrm((planes, planes, 3, 3), 0.15)
    bn2_s, bn2_b = bn_fold(planes)
    w3 = nrm((planes, cout), 0.2)
    bn3_s, bn3_b = bn_fold(cout)

    return dict(
        w1=w1, bn1_s=bn1_s, bn1_b=bn1_b,
        w2_oihw=w2_oihw, bn2_s=bn2_s, bn2_b=bn2_b,
        w3=w3, bn3_s=bn3_s, bn3_b=bn3_b,
        sea1_fc1=nrm((planes, h1), 0.5), sea1_fc2=nrm((h1, planes), 0.5),
        sea1_k3=nrm((3,), 0.5),
        sea_fc1=nrm((cout, h2), 0.5), sea_fc2=nrm((h2, cout), 0.5),
        sea_k3=nrm((3,), 0.5),
    )


# ---------------------------------------------------------------------------
# Pure-JAX reference (NHWC), used only for a sanity check.
# ---------------------------------------------------------------------------
def bottleneck_ref(x_nchw, params):
    x = jnp.transpose(x_nchw, (0, 2, 3, 1)).astype(jnp.float32)

    def sea(a, fc1, fc2, k3):
        y = jnp.mean(a, axis=(1, 2))
        y = jax.nn.sigmoid(jnp.maximum(y @ fc1, 0.0) @ fc2)
        ypad = jnp.pad(y, ((0, 0), (1, 1)))
        y = k3[0] * ypad[:, :-2] + k3[1] * ypad[:, 1:-1] + k3[2] * ypad[:, 2:]
        return a * jax.nn.sigmoid(y)[:, None, None, :]

    a = x @ params["w1"]
    a = a * params["bn1_s"] + params["bn1_b"]
    a = sea(a, params["sea1_fc1"], params["sea1_fc2"], params["sea1_k3"])
    a = jnp.maximum(a, 0.0)
    w_hwio = jnp.transpose(params["w2_oihw"], (2, 3, 1, 0))
    a = lax.conv_general_dilated(a, w_hwio, (1, 1), "SAME",
                                 dimension_numbers=("NHWC", "HWIO", "NHWC"))
    a = a * params["bn2_s"] + params["bn2_b"]
    a = sea(a, params["sea1_fc1"], params["sea1_fc2"], params["sea1_k3"])
    a = jnp.maximum(a, 0.0)
    a = a @ params["w3"]
    a = a * params["bn3_s"] + params["bn3_b"]
    a = sea(a, params["sea_fc1"], params["sea_fc2"], params["sea_k3"])
    a = jnp.maximum(a + x, 0.0)
    return jnp.transpose(a, (0, 3, 1, 2))


if __name__ == "__main__":
    N, inplanes, planes, H, W = 2, 32, 8, 8, 8   # inplanes == 4*planes -> identity shortcut
    key = jax.random.PRNGKey(0)
    kx, kparam = jax.random.split(key)
    x = jax.random.normal(kx, (N, inplanes, H, W), dtype=jnp.float32)
    params = init_params(kparam, inplanes, planes)
    kernel_params = prepare_kernel_params(params)

    out = bottleneck_pallas(x, kernel_params)
    out = jax.block_until_ready(out)

    ref = bottleneck_ref(x, params)
    assert out.shape == (N, planes * 4, H, W), out.shape
    assert bool(jnp.all(jnp.isfinite(out)))
    max_err = float(jnp.max(jnp.abs(out - ref)))
    assert max_err < 5e-2, f"max abs error vs reference: {max_err}"

    print("KERNEL_OK")
</pallas_src>

<mosaic_0001>
module attributes {stable_mosaic.version = 11 : i64} {
  func.func @_bottleneck_kernel(%arg0: i32, %arg1: memref<1x64x128xf32, #tpu.memory_space<vmem>>, %arg2: memref<128x128xbf16, #tpu.memory_space<vmem>>, %arg3: memref<1x128xf32, #tpu.memory_space<vmem>>, %arg4: memref<128x2xf32, #tpu.memory_space<vmem>>, %arg5: memref<2x128xf32, #tpu.memory_space<vmem>>, %arg6: memref<128x128xf32, #tpu.memory_space<vmem>>, %arg7: memref<9x128x128xbf16, #tpu.memory_space<vmem>>, %arg8: memref<1x128xf32, #tpu.memory_space<vmem>>, %arg9: memref<128x128xbf16, #tpu.memory_space<vmem>>, %arg10: memref<1x128xf32, #tpu.memory_space<vmem>>, %arg11: memref<128x10xf32, #tpu.memory_space<vmem>>, %arg12: memref<10x128xf32, #tpu.memory_space<vmem>>, %arg13: memref<128x128xf32, #tpu.memory_space<vmem>>, %arg14: memref<1x64x128xf32, #tpu.memory_space<vmem>>) attributes {dimension_semantics = [#tpu.dimension_semantics<parallel>], iteration_bounds = array<i64: 2>, scalar_prefetch = 0 : i64, scratch_operands = 0 : i64, tpu.core_type = #tpu.core_type<tc>, window_params = [{transform_indices = @transform_0, window_bounds = array<i64: 1, 64, 128>}, {pipeline_mode = #tpu.pipeline_mode<synchronous>, transform_indices = @transform_1, window_bounds = array<i64: 128, 128>}, {pipeline_mode = #tpu.pipeline_mode<synchronous>, transform_indices = @transform_2, window_bounds = array<i64: 1, 128>}, {pipeline_mode = #tpu.pipeline_mode<synchronous>, transform_indices = @transform_3, window_bounds = array<i64: 128, 2>}, {pipeline_mode = #tpu.pipeline_mode<synchronous>, transform_indices = @transform_4, window_bounds = array<i64: 2, 128>}, {pipeline_mode = #tpu.pipeline_mode<synchronous>, transform_indices = @transform_5, window_bounds = array<i64: 128, 128>}, {pipeline_mode = #tpu.pipeline_mode<synchronous>, transform_indices = @transform_6, window_bounds = array<i64: 9, 128, 128>}, {pipeline_mode = #tpu.pipeline_mode<synchronous>, transform_indices = @transform_7, window_bounds = array<i64: 1, 128>}, {pipeline_mode = #tpu.pipeline_mode<synchronous>, transform_indices = @transform_8, window_bounds = array<i64: 128, 128>}, {pipeline_mode = #tpu.pipeline_mode<synchronous>, transform_indices = @transform_9, window_bounds = array<i64: 1, 128>}, {pipeline_mode = #tpu.pipeline_mode<synchronous>, transform_indices = @transform_10, window_bounds = array<i64: 128, 10>}, {pipeline_mode = #tpu.pipeline_mode<synchronous>, transform_indices = @transform_11, window_bounds = array<i64: 10, 128>}, {pipeline_mode = #tpu.pipeline_mode<synchronous>, transform_indices = @transform_12, window_bounds = array<i64: 128, 128>}, {transform_indices = @transform_13, window_bounds = array<i64: 1, 64, 128>}]} {
    %c0 = arith.constant 0 : index
    %c0_0 = arith.constant 0 : index
    %c0_1 = arith.constant 0 : index
    %0 = vector.load %arg1[%c0, %c0_0, %c0_1] : memref<1x64x128xf32, #tpu.memory_space<vmem>>, vector<1x64x128xf32>
    %1 = vector.shape_cast %0 : vector<1x64x128xf32> to vector<64x128xf32>
    %c0_2 = arith.constant 0 : index
    %c0_3 = arith.constant 0 : index
    %2 = vector.load %arg2[%c0_2, %c0_3] : memref<128x128xbf16, #tpu.memory_space<vmem>>, vector<128x128xbf16>
    %3 = arith.truncf %1 : vector<64x128xf32> to vector<64x128xbf16>
    %cst = arith.constant dense<0.000000e+00> : vector<64x128xf32>
    %4 = tpu.matmul %3, %2, %cst {dimension_numbers = #tpu.dot_dimension_numbers<[1], [0], [0], [1], [0, 0, 1, 1], [], []>} : vector<64x128xbf16>, vector<128x128xbf16>, vector<64x128xf32> -> vector<64x128xf32>
    %c0_4 = arith.constant 0 : index
    %c0_5 = arith.constant 0 : index
    %5 = vector.load %arg3[%c0_4, %c0_5] : memref<1x128xf32, #tpu.memory_space<vmem>>, vector<1x128xf32>
    %6 = vector.broadcast %5 : vector<1x128xf32> to vector<64x128xf32>
    %7 = arith.addf %4, %6 : vector<64x128xf32>
    %c0_6 = arith.constant 0 : index
    %c0_7 = arith.constant 0 : index
    %8 = vector.load %arg4[%c0_6, %c0_7] : memref<128x2xf32, #tpu.memory_space<vmem>>, vector<128x2xf32>
    %c0_8 = arith.constant 0 : index
    %c0_9 = arith.constant 0 : index
    %9 = vector.load %arg5[%c0_8, %c0_9] : memref<2x128xf32, #tpu.memory_space<vmem>>, vector<2x128xf32>
    %c0_10 = arith.constant 0 : index
    %c0_11 = arith.constant 0 : index
    %10 = vector.load %arg6[%c0_10, %c0_11] : memref<128x128xf32, #tpu.memory_space<vmem>>, vector<128x128xf32>
    %cst_12 = arith.constant dense<0.000000e+00> : vector<128xf32>
    %11 = vector.multi_reduction <add>, %7, %cst_12 [0] : vector<64x128xf32> to vector<128xf32>
    %12 = vector.shape_cast %11 : vector<128xf32> to vector<1x128xf32>
    %cst_13 = arith.constant 6.400000e+01 : f32
    %13 = vector.broadcast %cst_13 : f32 to vector<1x128xf32>
    %14 = arith.divf %12, %13 : vector<1x128xf32>
    %cst_14 = arith.constant dense<0.000000e+00> : vector<1x2xf32>
    %15 = tpu.matmul %14, %8, %cst_14 {dimension_numbers = #tpu.dot_dimension_numbers<[1], [0], [0], [1], [0, 0, 1, 1], [], []>} : vector<1x128xf32>, vector<128x2xf32>, vector<1x2xf32> -> vector<1x2xf32>
    %cst_15 = arith.constant 0.000000e+00 : f32
    %16 = vector.broadcast %cst_15 : f32 to vector<1x2xf32>
    %17 = arith.maximumf %15, %16 : vector<1x2xf32>
    %cst_16 = arith.constant dense<0.000000e+00> : vector<1x128xf32>
    %18 = tpu.matmul %17, %9, %cst_16 {dimension_numbers = #tpu.dot_dimension_numbers<[1], [0], [0], [1], [0, 0, 1, 1], [], []>} : vector<1x2xf32>, vector<2x128xf32>, vector<1x128xf32> -> vector<1x128xf32>
    %19 = arith.negf %18 : vector<1x128xf32>
    %20 = math.exp %19 : vector<1x128xf32>
    %cst_17 = arith.constant 1.000000e+00 : f32
    %21 = vector.broadcast %cst_17 : f32 to vector<1x128xf32>
    %22 = arith.addf %21, %20 : vector<1x128xf32>
    %23 = arith.divf %21, %22 : vector<1x128xf32>
    %cst_18 = arith.constant dense<0.000000e+00> : vector<1x128xf32>
    %24 = tpu.matmul %23, %10, %cst_18 {dimension_numbers = #tpu.dot_dimension_numbers<[1], [0], [0], [1], [0, 0, 1, 1], [], []>} : vector<1x128xf32>, vector<128x128xf32>, vector<1x128xf32> -> vector<1x128xf32>
    %25 = arith.negf %24 : vector<1x128xf32>
    %26 = math.exp %25 : vector<1x128xf32>
    %cst_19 = arith.constant 1.000000e+00 : f32
    %27 = vector.broadcast %cst_19 : f32 to vector<1x128xf32>
    %28 = arith.addf %27, %26 : vector<1x128xf32>
    %29 = arith.divf %27, %28 : vector<1x128xf32>
    %30 = vector.broadcast %29 : vector<1x128xf32> to vector<64x128xf32>
    %31 = arith.mulf %7, %30 : vector<64x128xf32>
    %cst_20 = arith.constant 0.000000e+00 : f32
    %32 = vector.broadcast %cst_20 : f32 to vector<64x128xf32>
    %33 = arith.maximumf %31, %32 : vector<64x128xf32>
    %34 = tpu.iota {dimensions = array<i32: 0>} : vector<64x128xi32>
    %35 = tpu.iota {dimensions = array<i32: 0>} : vector<8x128xi32>
    %36 = tpu.concatenate %35, %35, %35, %35, %35, %35, %35, %35 in 0 : vector<8x128xi32>, vector<8x128xi32>, vector<8x128xi32>, vector<8x128xi32>, vector<8x128xi32>, vector<8x128xi32>, vector<8x128xi32>, vector<8x128xi32> -> vector<64x128xi32>
    %cst_21 = arith.constant 0.000000e+00 : f32
    %37 = vector.broadcast %cst_21 : f32 to vector<64x128xf32>
    %c9_i32 = arith.constant 9 : i32
    %38 = tpu.dynamic_rotate %33 by %c9_i32 dim 0 : vector<64x128xf32>, i32 -> vector<64x128xf32>
    %c8_i32 = arith.constant 8 : i32
    %39 = vector.broadcast %c8_i32 : i32 to vector<64x128xi32>
    %40 = arith.cmpi sge, %34, %39 : vector<64x128xi32>
    %c64_i32 = arith.constant 64 : i32
    %41 = vector.broadcast %c64_i32 : i32 to vector<64x128xi32>
    %42 = arith.cmpi slt, %34, %41 : vector<64x128xi32>
    %43 = arith.andi %40, %42 : vector<64x128xi1>
    %c-1_i32 = arith.constant -1 : i32
    %44 = vector.broadcast %c-1_i32 : i32 to vector<64x128xi32>
    %45 = arith.addi %36, %44 : vector<64x128xi32>
    %c0_i32 = arith.constant 0 : i32
    %46 = vector.broadcast %c0_i32 : i32 to vector<64x128xi32>
    %47 = arith.cmpi sge, %45, %46 : vector<64x128xi32>
    %c-1_i32_22 = arith.constant -1 : i32
    %48 = vector.broadcast %c-1_i32_22 : i32 to vector<64x128xi32>
    %49 = arith.addi %36, %48 : vector<64x128xi32>
    %c8_i32_23 = arith.constant 8 : i32
    %50 = vector.broadcast %c8_i32_23 : i32 to vector<64x128xi32>
    %51 = arith.cmpi slt, %49, %50 : vector<64x128xi32>
    %52 = arith.andi %47, %51 : vector<64x128xi1>
    %53 = arith.andi %43, %52 : vector<64x128xi1>
    %cst_24 = arith.constant 0.000000e+00 : f32
    %54 = vector.broadcast %cst_24 : f32 to vector<64x128xf32>
    %55 = arith.select %53, %38, %54 : vector<64x128xi1>, vector<64x128xf32>
    %c0_25 = arith.constant 0 : index
    %c0_26 = arith.constant 0 : index
    %c0_27 = arith.constant 0 : index
    %56 = vector.load %arg7[%c0_25, %c0_26, %c0_27] : memref<9x128x128xbf16, #tpu.memory_space<vmem>>, vector<1x128x128xbf16>
    %57 = vector.shape_cast %56 : vector<1x128x128xbf16> to vector<128x128xbf16>
    %58 = arith.truncf %55 : vector<64x128xf32> to vector<64x128xbf16>
    %cst_28 = arith.constant dense<0.000000e+00> : vector<64x128xf32>
    %59 = tpu.matmul %58, %57, %cst_28 {dimension_numbers = #tpu.dot_dimension_numbers<[1], [0], [0], [1], [0, 0, 1, 1], [], []>} : vector<64x128xbf16>, vector<128x128xbf16>, vector<64x128xf32> -> vector<64x128xf32>
    %60 = arith.addf %37, %59 : vector<64x128xf32>
    %c8_i32_29 = arith.constant 8 : i32
    %61 = tpu.dynamic_rotate %33 by %c8_i32_29 dim 0 : vector<64x128xf32>, i32 -> vector<64x128xf32>
    %c8_i32_30 = arith.constant 8 : i32
    %62 = vector.broadcast %c8_i32_30 : i32 to vector<64x128xi32>
    %63 = arith.cmpi sge, %34, %62 : vector<64x128xi32>
    %c64_i32_31 = arith.constant 64 : i32
    %64 = vector.broadcast %c64_i32_31 : i32 to vector<64x128xi32>
    %65 = arith.cmpi slt, %34, %64 : vector<64x128xi32>
    %66 = arith.andi %63, %65 : vector<64x128xi1>
    %c0_i32_32 = arith.constant 0 : i32
    %67 = vector.broadcast %c0_i32_32 : i32 to vector<64x128xi32>
    %68 = arith.addi %36, %67 : vector<64x128xi32>
    %c0_i32_33 = arith.constant 0 : i32
    %69 = vector.broadcast %c0_i32_33 : i32 to vector<64x128xi32>
    %70 = arith.cmpi sge, %68, %69 : vector<64x128xi32>
    %c0_i32_34 = arith.constant 0 : i32
    %71 = vector.broadcast %c0_i32_34 : i32 to vector<64x128xi32>
    %72 = arith.addi %36, %71 : vector<64x128xi32>
    %c8_i32_35 = arith.constant 8 : i32
    %73 = vector.broadcast %c8_i32_35 : i32 to vector<64x128xi32>
    %74 = arith.cmpi slt, %72, %73 : vector<64x128xi32>
    %75 = arith.andi %70, %74 : vector<64x128xi1>
    %76 = arith.andi %66, %75 : vector<64x128xi1>
    %cst_36 = arith.constant 0.000000e+00 : f32
    %77 = vector.broadcast %cst_36 : f32 to vector<64x128xf32>
    %78 = arith.select %76, %61, %77 : vector<64x128xi1>, vector<64x128xf32>
    %c1 = arith.constant 1 : index
    %c0_37 = arith.constant 0 : index
    %c0_38 = arith.constant 0 : index
    %79 = vector.load %arg7[%c1, %c0_37, %c0_38] : memref<9x128x128xbf16, #tpu.memory_space<vmem>>, vector<1x128x128xbf16>
    %80 = vector.shape_cast %79 : vector<1x128x128xbf16> to vector<128x128xbf16>
    %81 = arith.truncf %78 : vector<64x128xf32> to vector<64x128xbf16>
    %cst_39 = arith.constant dense<0.000000e+00> : vector<64x128xf32>
    %82 = tpu.matmul %81, %80, %cst_39 {dimension_numbers = #tpu.dot_dimension_numbers<[1], [0], [0], [1], [0, 0, 1, 1], [], []>} : vector<64x128xbf16>, vector<128x128xbf16>, vector<64x128xf32> -> vector<64x128xf32>
    %83 = arith.addf %60, %82 : vector<64x128xf32>
    %c7_i32 = arith.constant 7 : i32
    %84 = tpu.dynamic_rotate %33 by %c7_i32 dim 0 : vector<64x128xf32>, i32 -> vector<64x128xf32>
    %c8_i32_40 = arith.constant 8 : i32
    %85 = vector.broadcast %c8_i32_40 : i32 to vector<64x128xi32>
    %86 = arith.cmpi sge, %34, %85 : vector<64x128xi32>
    %c64_i32_41 = arith.constant 64 : i32
    %87 = vector.broadcast %c64_i32_41 : i32 to vector<64x128xi32>
    %88 = arith.cmpi slt, %34, %87 : vector<64x128xi32>
    %89 = arith.andi %86, %88 : vector<64x128xi1>
    %c1_i32 = arith.constant 1 : i32
    %90 = vector.broadcast %c1_i32 : i32 to vector<64x128xi32>
    %91 = arith.addi %36, %90 : vector<64x128xi32>
    %c0_i32_42 = arith.constant 0 : i32
    %92 = vector.broadcast %c0_i32_42 : i32 to vector<64x128xi32>
    %93 = arith.cmpi sge, %91, %92 : vector<64x128xi32>
    %c1_i32_43 = arith.constant 1 : i32
    %94 = vector.broadcast %c1_i32_43 : i32 to vector<64x128xi32>
    %95 = arith.addi %36, %94 : vector<64x128xi32>
    %c8_i32_44 = arith.constant 8 : i32
    %96 = vector.broadcast %c8_i32_44 : i32 to vector<64x128xi32>
    %97 = arith.cmpi slt, %95, %96 : vector<64x128xi32>
    %98 = arith.andi %93, %97 : vector<64x128xi1>
    %99 = arith.andi %89, %98 : vector<64x128xi1>
    %cst_45 = arith.constant 0.000000e+00 : f32
    %100 = vector.broadcast %cst_45 : f32 to vector<64x128xf32>
    %101 = arith.select %99, %84, %100 : vector<64x128xi1>, vector<64x128xf32>
    %c2 = arith.constant 2 : index
    %c0_46 = arith.constant 0 : index
    %c0_47 = arith.constant 0 : index
    %102 = vector.load %arg7[%c2, %c0_46, %c0_47] : memref<9x128x128xbf16, #tpu.memory_space<vmem>>, vector<1x128x128xbf16>
    %103 = vector.shape_cast %102 : vector<1x128x128xbf16> to vector<128x128xbf16>
    %104 = arith.truncf %101 : vector<64x128xf32> to vector<64x128xbf16>
    %cst_48 = arith.constant dense<0.000000e+00> : vector<64x128xf32>
    %105 = tpu.matmul %104, %103, %cst_48 {dimension_numbers = #tpu.dot_dimension_numbers<[1], [0], [0], [1], [0, 0, 1, 1], [], []>} : vector<64x128xbf16>, vector<128x128xbf16>, vector<64x128xf32> -> vector<64x128xf32>
    %106 = arith.addf %83, %105 : vector<64x128xf32>
    %c1_i32_49 = arith.constant 1 : i32
    %107 = tpu.dynamic_rotate %33 by %c1_i32_49 dim 0 : vector<64x128xf32>, i32 -> vector<64x128xf32>
    %c0_i32_50 = arith.constant 0 : i32
    %108 = vector.broadcast %c0_i32_50 : i32 to vector<64x128xi32>
    %109 = arith.cmpi sge, %34, %108 : vector<64x128xi32>
    %c64_i32_51 = arith.constant 64 : i32
    %110 = vector.broadcast %c64_i32_51 : i32 to vector<64x128xi32>
    %111 = arith.cmpi slt, %34, %110 : vector<64x128xi32>
    %112 = arith.andi %109, %111 : vector<64x128xi1>
    %c-1_i32_52 = arith.constant -1 : i32
    %113 = vector.broadcast %c-1_i32_52 : i32 to vector<64x128xi32>
    %114 = arith.addi %36, %113 : vector<64x128xi32>
    %c0_i32_53 = arith.constant 0 : i32
    %115 = vector.broadcast %c0_i32_53 : i32 to vector<64x128xi32>
    %116 = arith.cmpi sge, %114, %115 : vector<64x128xi32>
    %c-1_i32_54 = arith.constant -1 : i32
    %117 = vector.broadcast %c-1_i32_54 : i32 to vector<64x128xi32>
    %118 = arith.addi %36, %117 : vector<64x128xi32>
    %c8_i32_55 = arith.constant 8 : i32
    %119 = vector.broadcast %c8_i32_55 : i32 to vector<64x128xi32>
    %120 = arith.cmpi slt, %118, %119 : vector<64x128xi32>
    %121 = arith.andi %116, %120 : vector<64x128xi1>
    %122 = arith.andi %112, %121 : vector<64x128xi1>
    %cst_56 = arith.constant 0.000000e+00 : f32
    %123 = vector.broadcast %cst_56 : f32 to vector<64x128xf32>
    %124 = arith.select %122, %107, %123 : vector<64x128xi1>, vector<64x128xf32>
    %c3 = arith.constant 3 : index
    %c0_57 = arith.constant 0 : index
    %c0_58 = arith.constant 0 : index
    %125 = vector.load %arg7[%c3, %c0_57, %c0_58] : memref<9x128x128xbf16, #tpu.memory_space<vmem>>, vector<1x128x128xbf16>
    %126 = vector.shape_cast %125 : vector<1x128x128xbf16> to vector<128x128xbf16>
    %127 = arith.truncf %124 : vector<64x128xf32> to vector<64x128xbf16>
    %cst_59 = arith.constant dense<0.000000e+00> : vector<64x128xf32>
    %128 = tpu.matmul %127, %126, %cst_59 {dimension_numbers = #tpu.dot_dimension_numbers<[1], [0], [0], [1], [0, 0, 1, 1], [], []>} : vector<64x128xbf16>, vector<128x128xbf16>, vector<64x128xf32> -> vector<64x128xf32>
    %129 = arith.addf %106, %128 : vector<64x128xf32>
    %c4 = arith.constant 4 : index
    %c0_60 = arith.constant 0 : index
    %c0_61 = arith.constant 0 : index
    %130 = vector.load %arg7[%c4, %c0_60, %c0_61] : memref<9x128x128xbf16, #tpu.memory_space<vmem>>, vector<1x128x128xbf16>
    %131 = vector.shape_cast %130 : vector<1x128x128xbf16> to vector<128x128xbf16>
    %132 = arith.truncf %33 : vector<64x128xf32> to vector<64x128xbf16>
    %cst_62 = arith.constant dense<0.000000e+00> : vector<64x128xf32>
    %133 = tpu.matmul %132, %131, %cst_62 {dimension_numbers = #tpu.dot_dimension_numbers<[1], [0], [0], [1], [0, 0, 1, 1], [], []>} : vector<64x128xbf16>, vector<128x128xbf16>, vector<64x128xf32> -> vector<64x128xf32>
    %134 = arith.addf %129, %133 : vector<64x128xf32>
    %c63_i32 = arith.constant 63 : i32
    %135 = tpu.dynamic_rotate %33 by %c63_i32 dim 0 : vector<64x128xf32>, i32 -> vector<64x128xf32>
    %c0_i32_63 = arith.constant 0 : i32
    %136 = vector.broadcast %c0_i32_63 : i32 to vector<64x128xi32>
    %137 = arith.cmpi sge, %34, %136 : vector<64x128xi32>
    %c64_i32_64 = arith.constant 64 : i32
    %138 = vector.broadcast %c64_i32_64 : i32 to vector<64x128xi32>
    %139 = arith.cmpi slt, %34, %138 : vector<64x128xi32>
    %140 = arith.andi %137, %139 : vector<64x128xi1>
    %c1_i32_65 = arith.constant 1 : i32
    %141 = vector.broadcast %c1_i32_65 : i32 to vector<64x128xi32>
    %142 = arith.addi %36, %141 : vector<64x128xi32>
    %c0_i32_66 = arith.constant 0 : i32
    %143 = vector.broadcast %c0_i32_66 : i32 to vector<64x128xi32>
    %144 = arith.cmpi sge, %142, %143 : vector<64x128xi32>
    %c1_i32_67 = arith.constant 1 : i32
    %145 = vector.broadcast %c1_i32_67 : i32 to vector<64x128xi32>
    %146 = arith.addi %36, %145 : vector<64x128xi32>
    %c8_i32_68 = arith.constant 8 : i32
    %147 = vector.broadcast %c8_i32_68 : i32 to vector<64x128xi32>
    %148 = arith.cmpi slt, %146, %147 : vector<64x128xi32>
    %149 = arith.andi %144, %148 : vector<64x128xi1>
    %150 = arith.andi %140, %149 : vector<64x128xi1>
    %cst_69 = arith.constant 0.000000e+00 : f32
    %151 = vector.broadcast %cst_69 : f32 to vector<64x128xf32>
    %152 = arith.select %150, %135, %151 : vector<64x128xi1>, vector<64x128xf32>
    %c5 = arith.constant 5 : index
    %c0_70 = arith.constant 0 : index
    %c0_71 = arith.constant 0 : index
    %153 = vector.load %arg7[%c5, %c0_70, %c0_71] : memref<9x128x128xbf16, #tpu.memory_space<vmem>>, vector<1x128x128xbf16>
    %154 = vector.shape_cast %153 : vector<1x128x128xbf16> to vector<128x128xbf16>
    %155 = arith.truncf %152 : vector<64x128xf32> to vector<64x128xbf16>
    %cst_72 = arith.constant dense<0.000000e+00> : vector<64x128xf32>
    %156 = tpu.matmul %155, %154, %cst_72 {dimension_numbers = #tpu.dot_dimension_numbers<[1], [0], [0], [1], [0, 0, 1, 1], [], []>} : vector<64x128xbf16>, vector<128x128xbf16>, vector<64x128xf32> -> vector<64x128xf32>
    %157 = arith.addf %134, %156 : vector<64x128xf32>
    %c57_i32 = arith.constant 57 : i32
    %158 = tpu.dynamic_rotate %33 by %c57_i32 dim 0 : vector<64x128xf32>, i32 -> vector<64x128xf32>
    %c0_i32_73 = arith.constant 0 : i32
    %159 = vector.broadcast %c0_i32_73 : i32 to vector<64x128xi32>
    %160 = arith.cmpi sge, %34, %159 : vector<64x128xi32>
    %c56_i32 = arith.constant 56 : i32
    %161 = vector.broadcast %c56_i32 : i32 to vector<64x128xi32>
    %162 = arith.cmpi slt, %34, %161 : vector<64x128xi32>
    %163 = arith.andi %160, %162 : vector<64x128xi1>
    %c-1_i32_74 = arith.constant -1 : i32
    %164 = vector.broadcast %c-1_i32_74 : i32 to vector<64x128xi32>
    %165 = arith.addi %36, %164 : vector<64x128xi32>
    %c0_i32_75 = arith.constant 0 : i32
    %166 = vector.broadcast %c0_i32_75 : i32 to vector<64x128xi32>
    %167 = arith.cmpi sge, %165, %166 : vector<64x128xi32>
    %c-1_i32_76 = arith.constant -1 : i32
    %168 = vector.broadcast %c-1_i32_76 : i32 to vector<64x128xi32>
    %169 = arith.addi %36, %168 : vector<64x128xi32>
    %c8_i32_77 = arith.constant 8 : i32
    %170 = vector.broadcast %c8_i32_77 : i32 to vector<64x128xi32>
    %171 = arith.cmpi slt, %169, %170 : vector<64x128xi32>
    %172 = arith.andi %167, %171 : vector<64x128xi1>
    %173 = arith.andi %163, %172 : vector<64x128xi1>
    %cst_78 = arith.constant 0.000000e+00 : f32
    %174 = vector.broadcast %cst_78 : f32 to vector<64x128xf32>
    %175 = arith.select %173, %158, %174 : vector<64x128xi1>, vector<64x128xf32>
    %c6 = arith.constant 6 : index
    %c0_79 = arith.constant 0 : index
    %c0_80 = arith.constant 0 : index
    %176 = vector.load %arg7[%c6, %c0_79, %c0_80] : memref<9x128x128xbf16, #tpu.memory_space<vmem>>, vector<1x128x128xbf16>
    %177 = vector.shape_cast %176 : vector<1x128x128xbf16> to vector<128x128xbf16>
    %178 = arith.truncf %175 : vector<64x128xf32> to vector<64x128xbf16>
    %cst_81 = arith.constant dense<0.000000e+00> : vector<64x128xf32>
    %179 = tpu.matmul %178, %177, %cst_81 {dimension_numbers = #tpu.dot_dimension_numbers<[1], [0], [0], [1], [0, 0, 1, 1], [], []>} : vector<64x128xbf16>, vector<128x128xbf16>, vector<64x128xf32> -> vector<64x128xf32>
    %180 = arith.addf %157, %179 : vector<64x128xf32>
    %c56_i32_82 = arith.constant 56 : i32
    %181 = tpu.dynamic_rotate %33 by %c56_i32_82 dim 0 : vector<64x128xf32>, i32 -> vector<64x128xf32>
    %c0_i32_83 = arith.constant 0 : i32
    %182 = vector.broadcast %c0_i32_83 : i32 to vector<64x128xi32>
    %183 = arith.cmpi sge, %34, %182 : vector<64x128xi32>
    %c56_i32_84 = arith.constant 56 : i32
    %184 = vector.broadcast %c56_i32_84 : i32 to vector<64x128xi32>
    %185 = arith.cmpi slt, %34, %184 : vector<64x128xi32>
    %186 = arith.andi %183, %185 : vector<64x128xi1>
    %c0_i32_85 = arith.constant 0 : i32
    %187 = vector.broadcast %c0_i32_85 : i32 to vector<64x128xi32>
    %188 = arith.addi %36, %187 : vector<64x128xi32>
    %c0_i32_86 = arith.constant 0 : i32
    %189 = vector.broadcast %c0_i32_86 : i32 to vector<64x128xi32>
    %190 = arith.cmpi sge, %188, %189 : vector<64x128xi32>
    %c0_i32_87 = arith.constant 0 : i32
    %191 = vector.broadcast %c0_i32_87 : i32 to vector<64x128xi32>
    %192 = arith.addi %36, %191 : vector<64x128xi32>
    %c8_i32_88 = arith.constant 8 : i32
    %193 = vector.broadcast %c8_i32_88 : i32 to vector<64x128xi32>
    %194 = arith.cmpi slt, %192, %193 : vector<64x128xi32>
    %195 = arith.andi %190, %194 : vector<64x128xi1>
    %196 = arith.andi %186, %195 : vector<64x128xi1>
    %cst_89 = arith.constant 0.000000e+00 : f32
    %197 = vector.broadcast %cst_89 : f32 to vector<64x128xf32>
    %198 = arith.select %196, %181, %197 : vector<64x128xi1>, vector<64x128xf32>
    %c7 = arith.constant 7 : index
    %c0_90 = arith.constant 0 : index
    %c0_91 = arith.constant 0 : index
    %199 = vector.load %arg7[%c7, %c0_90, %c0_91] : memref<9x128x128xbf16, #tpu.memory_space<vmem>>, vector<1x128x128xbf16>
    %200 = vector.shape_cast %199 : vector<1x128x128xbf16> to vector<128x128xbf16>
    %201 = arith.truncf %198 : vector<64x128xf32> to vector<64x128xbf16>
    %cst_92 = arith.constant dense<0.000000e+00> : vector<64x128xf32>
    %202 = tpu.matmul %201, %200, %cst_92 {dimension_numbers = #tpu.dot_dimension_numbers<[1], [0], [0], [1], [0, 0, 1, 1], [], []>} : vector<64x128xbf16>, vector<128x128xbf16>, vector<64x128xf32> -> vector<64x128xf32>
    %203 = arith.addf %180, %202 : vector<64x128xf32>
    %c55_i32 = arith.constant 55 : i32
    %204 = tpu.dynamic_rotate %33 by %c55_i32 dim 0 : vector<64x128xf32>, i32 -> vector<64x128xf32>
    %c0_i32_93 = arith.constant 0 : i32
    %205 = vector.broadcast %c0_i32_93 : i32 to vector<64x128xi32>
    %206 = arith.cmpi sge, %34, %205 : vector<64x128xi32>
    %c56_i32_94 = arith.constant 56 : i32
    %207 = vector.broadcast %c56_i32_94 : i32 to vector<64x128xi32>
    %208 = arith.cmpi slt, %34, %207 : vector<64x128xi32>
    %209 = arith.andi %206, %208 : vector<64x128xi1>
    %c1_i32_95 = arith.constant 1 : i32
    %210 = vector.broadcast %c1_i32_95 : i32 to vector<64x128xi32>
    %211 = arith.addi %36, %210 : vector<64x128xi32>
    %c0_i32_96 = arith.constant 0 : i32
    %212 = vector.broadcast %c0_i32_96 : i32 to vector<64x128xi32>
    %213 = arith.cmpi sge, %211, %212 : vector<64x128xi32>
    %c1_i32_97 = arith.constant 1 : i32
    %214 = vector.broadcast %c1_i32_97 : i32 to vector<64x128xi32>
    %215 = arith.addi %36, %214 : vector<64x128xi32>
    %c8_i32_98 = arith.constant 8 : i32
    %216 = vector.broadcast %c8_i32_98 : i32 to vector<64x128xi32>
    %217 = arith.cmpi slt, %215, %216 : vector<64x128xi32>
    %218 = arith.andi %213, %217 : vector<64x128xi1>
    %219 = arith.andi %209, %218 : vector<64x128xi1>
    %cst_99 = arith.constant 0.000000e+00 : f32
    %220 = vector.broadcast %cst_99 : f32 to vector<64x128xf32>
    %221 = arith.select %219, %204, %220 : vector<64x128xi1>, vector<64x128xf32>
    %c8 = arith.constant 8 : index
    %c0_100 = arith.constant 0 : index
    %c0_101 = arith.constant 0 : index
    %222 = vector.load %arg7[%c8, %c0_100, %c0_101] : memref<9x128x128xbf16, #tpu.memory_space<vmem>>, vector<1x128x128xbf16>
    %223 = vector.shape_cast %222 : vector<1x128x128xbf16> to vector<128x128xbf16>
    %224 = arith.truncf %221 : vector<64x128xf32> to vector<64x128xbf16>
    %cst_102 = arith.constant dense<0.000000e+00> : vector<64x128xf32>
    %225 = tpu.matmul %224, %223, %cst_102 {dimension_numbers = #tpu.dot_dimension_numbers<[1], [0], [0], [1], [0, 0, 1, 1], [], []>} : vector<64x128xbf16>, vector<128x128xbf16>, vector<64x128xf32> -> vector<64x128xf32>
    %226 = arith.addf %203, %225 : vector<64x128xf32>
    %c0_103 = arith.constant 0 : index
    %c0_104 = arith.constant 0 : index
    %227 = vector.load %arg8[%c0_103, %c0_104] : memref<1x128xf32, #tpu.memory_space<vmem>>, vector<1x128xf32>
    %228 = vector.broadcast %227 : vector<1x128xf32> to vector<64x128xf32>
    %229 = arith.addf %226, %228 : vector<64x128xf32>
    %c0_105 = arith.constant 0 : index
    %c0_106 = arith.constant 0 : index
    %230 = vector.load %arg4[%c0_105, %c0_106] : memref<128x2xf32, #tpu.memory_space<vmem>>, vector<128x2xf32>
    %c0_107 = arith.constant 0 : index
    %c0_108 = arith.constant 0 : index
    %231 = vector.load %arg5[%c0_107, %c0_108] : memref<2x128xf32, #tpu.memory_space<vmem>>, vector<2x128xf32>
    %c0_109 = arith.constant 0 : index
    %c0_110 = arith.constant 0 : index
    %232 = vector.load %arg6[%c0_109, %c0_110] : memref<128x128xf32, #tpu.memory_space<vmem>>, vector<128x128xf32>
    %cst_111 = arith.constant dense<0.000000e+00> : vector<128xf32>
    %233 = vector.multi_reduction <add>, %229, %cst_111 [0] : vector<64x128xf32> to vector<128xf32>
    %234 = vector.shape_cast %233 : vector<128xf32> to vector<1x128xf32>
    %cst_112 = arith.constant 6.400000e+01 : f32
    %235 = vector.broadcast %cst_112 : f32 to vector<1x128xf32>
    %236 = arith.divf %234, %235 : vector<1x128xf32>
    %cst_113 = arith.constant dense<0.000000e+00> : vector<1x2xf32>
    %237 = tpu.matmul %236, %230, %cst_113 {dimension_numbers = #tpu.dot_dimension_numbers<[1], [0], [0], [1], [0, 0, 1, 1], [], []>} : vector<1x128xf32>, vector<128x2xf32>, vector<1x2xf32> -> vector<1x2xf32>
    %cst_114 = arith.constant 0.000000e+00 : f32
    %238 = vector.broadcast %cst_114 : f32 to vector<1x2xf32>
    %239 = arith.maximumf %237, %238 : vector<1x2xf32>
    %cst_115 = arith.constant dense<0.000000e+00> : vector<1x128xf32>
    %240 = tpu.matmul %239, %231, %cst_115 {dimension_numbers = #tpu.dot_dimension_numbers<[1], [0], [0], [1], [0, 0, 1, 1], [], []>} : vector<1x2xf32>, vector<2x128xf32>, vector<1x128xf32> -> vector<1x128xf32>
    %241 = arith.negf %240 : vector<1x128xf32>
    %242 = math.exp %241 : vector<1x128xf32>
    %cst_116 = arith.constant 1.000000e+00 : f32
    %243 = vector.broadcast %cst_116 : f32 to vector<1x128xf32>
    %244 = arith.addf %243, %242 : vector<1x128xf32>
    %245 = arith.divf %243, %244 : vector<1x128xf32>
    %cst_117 = arith.constant dense<0.000000e+00> : vector<1x128xf32>
    %246 = tpu.matmul %245, %232, %cst_117 {dimension_numbers = #tpu.dot_dimension_numbers<[1], [0], [0], [1], [0, 0, 1, 1], [], []>} : vector<1x128xf32>, vector<128x128xf32>, vector<1x128xf32> -> vector<1x128xf32>
    %247 = arith.negf %246 : vector<1x128xf32>
    %248 = math.exp %247 : vector<1x128xf32>
    %cst_118 = arith.constant 1.000000e+00 : f32
    %249 = vector.broadcast %cst_118 : f32 to vector<1x128xf32>
    %250 = arith.addf %249, %248 : vector<1x128xf32>
    %251 = arith.divf %249, %250 : vector<1x128xf32>
    %252 = vector.broadcast %251 : vector<1x128xf32> to vector<64x128xf32>
    %253 = arith.mulf %229, %252 : vector<64x128xf32>
    %cst_119 = arith.constant 0.000000e+00 : f32
    %254 = vector.broadcast %cst_119 : f32 to vector<64x128xf32>
    %255 = arith.maximumf %253, %254 : vector<64x128xf32>
    %c0_120 = arith.constant 0 : index
    %c0_121 = arith.constant 0 : index
    %256 = vector.load %arg9[%c0_120, %c0_121] : memref<128x128xbf16, #tpu.memory_space<vmem>>, vector<128x128xbf16>
    %257 = arith.truncf %255 : vector<64x128xf32> to vector<64x128xbf16>
    %cst_122 = arith.constant dense<0.000000e+00> : vector<64x128xf32>
    %258 = tpu.matmul %257, %256, %cst_122 {dimension_numbers = #tpu.dot_dimension_numbers<[1], [0], [0], [1], [0, 0, 1, 1], [], []>} : vector<64x128xbf16>, vector<128x128xbf16>, vector<64x128xf32> -> vector<64x128xf32>
    %c0_123 = arith.constant 0 : index
    %c0_124 = arith.constant 0 : index
    %259 = vector.load %arg10[%c0_123, %c0_124] : memref<1x128xf32, #tpu.memory_space<vmem>>, vector<1x128xf32>
    %260 = vector.broadcast %259 : vector<1x128xf32> to vector<64x128xf32>
    %261 = arith.addf %258, %260 : vector<64x128xf32>
    %c0_125 = arith.constant 0 : index
    %c0_126 = arith.constant 0 : index
    %262 = vector.load %arg11[%c0_125, %c0_126] : memref<128x10xf32, #tpu.memory_space<vmem>>, vector<128x10xf32>
    %c0_127 = arith.constant 0 : index
    %c0_128 = arith.constant 0 : index
    %263 = vector.load %arg12[%c0_127, %c0_128] : memref<10x128xf32, #tpu.memory_space<vmem>>, vector<10x128xf32>
    %c0_129 = arith.constant 0 : index
    %c0_130 = arith.constant 0 : index
    %264 = vector.load %arg13[%c0_129, %c0_130] : memref<128x128xf32, #tpu.memory_space<vmem>>, vector<128x128xf32>
    %cst_131 = arith.constant dense<0.000000e+00> : vector<128xf32>
    %265 = vector.multi_reduction <add>, %261, %cst_131 [0] : vector<64x128xf32> to vector<128xf32>
    %266 = vector.shape_cast %265 : vector<128xf32> to vector<1x128xf32>
    %cst_132 = arith.constant 6.400000e+01 : f32
    %267 = vector.broadcast %cst_132 : f32 to vector<1x128xf32>
    %268 = arith.divf %266, %267 : vector<1x128xf32>
    %cst_133 = arith.constant dense<0.000000e+00> : vector<1x10xf32>
    %269 = tpu.matmul %268, %262, %cst_133 {dimension_numbers = #tpu.dot_dimension_numbers<[1], [0], [0], [1], [0, 0, 1, 1], [], []>} : vector<1x128xf32>, vector<128x10xf32>, vector<1x10xf32> -> vector<1x10xf32>
    %cst_134 = arith.constant 0.000000e+00 : f32
    %270 = vector.broadcast %cst_134 : f32 to vector<1x10xf32>
    %271 = arith.maximumf %269, %270 : vector<1x10xf32>
    %cst_135 = arith.constant dense<0.000000e+00> : vector<1x128xf32>
    %272 = tpu.matmul %271, %263, %cst_135 {dimension_numbers = #tpu.dot_dimension_numbers<[1], [0], [0], [1], [0, 0, 1, 1], [], []>} : vector<1x10xf32>, vector<10x128xf32>, vector<1x128xf32> -> vector<1x128xf32>
    %273 = arith.negf %272 : vector<1x128xf32>
    %274 = math.exp %273 : vector<1x128xf32>
    %cst_136 = arith.constant 1.000000e+00 : f32
    %275 = vector.broadcast %cst_136 : f32 to vector<1x128xf32>
    %276 = arith.addf %275, %274 : vector<1x128xf32>
    %277 = arith.divf %275, %276 : vector<1x128xf32>
    %cst_137 = arith.constant dense<0.000000e+00> : vector<1x128xf32>
    %278 = tpu.matmul %277, %264, %cst_137 {dimension_numbers = #tpu.dot_dimension_numbers<[1], [0], [0], [1], [0, 0, 1, 1], [], []>} : vector<1x128xf32>, vector<128x128xf32>, vector<1x128xf32> -> vector<1x128xf32>
    %279 = arith.negf %278 : vector<1x128xf32>
    %280 = math.exp %279 : vector<1x128xf32>
    %cst_138 = arith.constant 1.000000e+00 : f32
    %281 = vector.broadcast %cst_138 : f32 to vector<1x128xf32>
    %282 = arith.addf %281, %280 : vector<1x128xf32>
    %283 = arith.divf %281, %282 : vector<1x128xf32>
    %284 = vector.broadcast %283 : vector<1x128xf32> to vector<64x128xf32>
    %285 = arith.mulf %261, %284 : vector<64x128xf32>
    %286 = arith.addf %285, %1 : vector<64x128xf32>
    %cst_139 = arith.constant 0.000000e+00 : f32
    %287 = vector.broadcast %cst_139 : f32 to vector<64x128xf32>
    %288 = arith.maximumf %286, %287 : vector<64x128xf32>
    %c0_140 = arith.constant 0 : index
    %c0_141 = arith.constant 0 : index
    %c0_142 = arith.constant 0 : index
    %289 = vector.load %arg14[%c0_140, %c0_141, %c0_142] : memref<1x64x128xf32, #tpu.memory_space<vmem>>, vector<1x64x128xf32>
    %290 = vector.shape_cast %289 : vector<1x64x128xf32> to vector<64x128xf32>
    %291 = vector.shape_cast %288 : vector<64x128xf32> to vector<1x64x128xf32>
    tpu.vector_store %arg14[%c0_140, %c0_141, %c0_142], %291 {strides = array<i32>} : memref<1x64x128xf32, #tpu.memory_space<vmem>>, vector<1x64x128xf32>,
    return
  }
  func.func @transform_0(%arg0: i32) -> (i32, i32, i32) {
    %c0_i32 = arith.constant 0 : i32
    %c0_i32_0 = arith.constant 0 : i32
    %c0_i32_1 = arith.constant 0 : i32
    return %arg0, %c0_i32, %c0_i32_0 : i32, i32, i32
  }
  func.func @transform_1(%arg0: i32) -> (i32, i32) {
    %c0_i32 = arith.constant 0 : i32
    %c0_i32_0 = arith.constant 0 : i32
    %c0_i32_1 = arith.constant 0 : i32
    return %c0_i32, %c0_i32_0 : i32, i32
  }
  func.func @transform_2(%arg0: i32) -> (i32, i32) {
    %c0_i32 = arith.constant 0 : i32
    %c0_i32_0 = arith.constant 0 : i32
    %c0_i32_1 = arith.constant 0 : i32
    return %c0_i32, %c0_i32_0 : i32, i32
  }
  func.func @transform_3(%arg0: i32) -> (i32, i32) {
    %c0_i32 = arith.constant 0 : i32
    %c0_i32_0 = arith.constant 0 : i32
    %c0_i32_1 = arith.constant 0 : i32
    return %c0_i32, %c0_i32_0 : i32, i32
  }
  func.func @transform_4(%arg0: i32) -> (i32, i32) {
    %c0_i32 = arith.constant 0 : i32
    %c0_i32_0 = arith.constant 0 : i32
    %c0_i32_1 = arith.constant 0 : i32
    return %c0_i32, %c0_i32_0 : i32, i32
  }
  func.func @transform_5(%arg0: i32) -> (i32, i32) {
    %c0_i32 = arith.constant 0 : i32
    %c0_i32_0 = arith.constant 0 : i32
    %c0_i32_1 = arith.constant 0 : i32
    return %c0_i32, %c0_i32_0 : i32, i32
  }
  func.func @transform_6(%arg0: i32) -> (i32, i32, i32) {
    %c0_i32 = arith.constant 0 : i32
    %c0_i32_0 = arith.constant 0 : i32
    %c0_i32_1 = arith.constant 0 : i32
    %c0_i32_2 = arith.constant 0 : i32
    return %c0_i32, %c0_i32_0, %c0_i32_1 : i32, i32, i32
  }
  func.func @transform_7(%arg0: i32) -> (i32, i32) {
    %c0_i32 = arith.constant 0 : i32
    %c0_i32_0 = arith.constant 0 : i32
    %c0_i32_1 = arith.constant 0 : i32
    return %c0_i32, %c0_i32_0 : i32, i32
  }
  func.func @transform_8(%arg0: i32) -> (i32, i32) {
    %c0_i32 = arith.constant 0 : i32
    %c0_i32_0 = arith.constant 0 : i32
    %c0_i32_1 = arith.constant 0 : i32
    return %c0_i32, %c0_i32_0 : i32, i32
  }
  func.func @transform_9(%arg0: i32) -> (i32, i32) {
    %c0_i32 = arith.constant 0 : i32
    %c0_i32_0 = arith.constant 0 : i32
    %c0_i32_1 = arith.constant 0 : i32
    return %c0_i32, %c0_i32_0 : i32, i32
  }
  func.func @transform_10(%arg0: i32) -> (i32, i32) {
    %c0_i32 = arith.constant 0 : i32
    %c0_i32_0 = arith.constant 0 : i32
    %c0_i32_1 = arith.constant 0 : i32
    return %c0_i32, %c0_i32_0 : i32, i32
  }
  func.func @transform_11(%arg0: i32) -> (i32, i32) {
    %c0_i32 = arith.constant 0 : i32
    %c0_i32_0 = arith.constant 0 : i32
    %c0_i32_1 = arith.constant 0 : i32
    return %c0_i32, %c0_i32_0 : i32, i32
  }
  func.func @transform_12(%arg0: i32) -> (i32, i32) {
    %c0_i32 = arith.constant 0 : i32
    %c0_i32_0 = arith.constant 0 : i32
    %c0_i32_1 = arith.constant 0 : i32
    return %c0_i32, %c0_i32_0 : i32, i32
  }
  func.func @transform_13(%arg0: i32) -> (i32, i32, i32) {
    %c0_i32 = arith.constant 0 : i32
    %c0_i32_0 = arith.constant 0 : i32
    %c0_i32_1 = arith.constant 0 : i32
    return %arg0, %c0_i32, %c0_i32_0 : i32, i32, i32
  }
}

</mosaic_0001>

<bundles_post_ra>
// kernel: tpu_custom_call.1
= control target key start
LH: loop header
LB: loop body
LE: loop exit
PB: predicated region body
PF: predicated region fallthrough
CT: control target
= control target key end

     0   :  { %s5693_s0 = inlined_call_operand.hbm [shape: f32[2,64,128], index: 0, kind: input, shape index: {}, may-alias: {0,13}]   ;;  %s5694_s1 = inlined_call_operand.vmem [shape: bf16[128,128], index: 1, kind: input, shape index: {}]   ;;  %s5695_s2 = inlined_call_operand.vmem [shape: f32[1,128], index: 2, kind: input, shape index: {}]   ;;  %s5696_s3 = inlined_call_operand.vmem [shape: f32[128,2], index: 3, kind: input, shape index: {}]   ;;  %s5697_s4 = inlined_call_operand.vmem [shape: f32[2,128], index: 4, kind: input, shape index: {}]   ;;  %s5698_s5 = inlined_call_operand.vmem [shape: f32[128,128], index: 5, kind: input, shape index: {}]   ;;  %s5699_s6 = inlined_call_operand.hbm [shape: bf16[9,128,128], index: 6, kind: input, shape index: {}]   ;;  %s5700_s7 = inlined_call_operand.vmem [shape: f32[1,128], index: 7, kind: input, shape index: {}]   ;;  %s5701_s8 = inlined_call_operand.vmem [shape: bf16[128,128], index: 8, kind: input, shape index: {}]   ;;  %s5702_s9 = inlined_call_operand.vmem [shape: f32[1,128], index: 9, kind: input, shape index: {}]   ;;  %s5703_s10 = inlined_call_operand.vmem [shape: f32[128,10], index: 10, kind: input, shape index: {}]   ;;  %s5704_s11 = inlined_call_operand.vmem [shape: f32[10,128], index: 11, kind: input, shape index: {}]   ;;  %s5705_s12 = inlined_call_operand.vmem [shape: f32[128,128], index: 12, kind: input, shape index: {}]   ;;  %s5706_s13 = inlined_call_operand.hbm [shape: f32[2,64,128], index: 13, kind: output, shape index: {}, may-alias: {0,13}]  }
   0x1   :  { %5723 = sst [smem:[#allocation23_spill]] %s5699_s6 }
   0x2   :  { %5724 = sst [smem:[#allocation24_spill]] %s5704_s11 }
   0x3   :  { %5725 = sst [smem:[#allocation25_spill]] %s5705_s12 }
   0x4   :  { %5726 = sst [smem:[#allocation26_spill]] %s5706_s13 }
   0x5   :  { %18 = vsyncpa [#allocation3], 0 }
   0x6   :  { %20 = vsyncpa [#allocation3 + $0x1], 0 }
   0x7   :  { %21 = vsyncpa [#allocation6], 0 }
   0x8   :  { %22 = vsyncpa [#allocation4], 0 }
   0x9   :  { %24 = vsyncpa [#allocation4 + $0x1], 0  ;;  %s4579_s25 = smov 0   ;;  %s4581_s26 = smov 0  }
   0xa   :  { %s4583_s27 = smov 0   ;;  %s4585_s28 = smov 0  }
   0xb LB: > { %5727 = sst [smem:[#allocation11_spill]] %s4483_s25  ;;  %s4600_s29 = sadd.s32 4294967295, %s4495_s28   ;;  %s4495_s28 = sphi %s4585_s28, %s5775_s28   ;;  %s4491_s27 = sphi %s4583_s27, %s5778_s27   ;;  %s4487_s26 = sphi %s4581_s26, %s5777_s26   ;;  %s4483_s25 = sphi %s4579_s25, %s5776_s25  }
   0xc   : > { %s3246_s30 = sadd.s32 4294967294, %s4495_s28   ;;  %p50_p0 = scmp.ne.s32.totalorder %s4487_s26, %s4483_s25 }
   0xd   : > { %p5714_p1 = scmp.eq.s32.totalorder %s4600_s29, 0  ;;  %p332_p3 = scmp.eq.s32.totalorder %s3246_s30, 1 }
   0xe   : > { %p3247_p5 = scmp.ge.s32.totalorder %s4495_s28, 1  ;;  %p339_p7 = scmp.lt.s32.totalorder %s4495_s28, 3 }
   0xf   : > { %p4609_p4 = por %p5714_p1, %p50_p0  ;;  %p4614_p6 = por %p332_p3, %p50_p0 }
  0x10   : > { %p4619_p8 = pnand %p3247_p5, %p339_p7  ;;  %s4497_s17 = smov [#allocation5]  }
  0x11   : > { %s5728_s14 = scalar_select %p4609_p4, 1, 0 }
  0x12   : > { %s5729_s15 = scalar_select %p4614_p6, 1, 0 }
  0x13   : > { %s5731_s16 = scalar_select %p4619_p8, 1, 0 }
  0x14   : > { %5730 = sst [smem:[#allocation12_spill]] %s5729_s15  ;;  %s366_s18 = sshll.u32 %s4497_s17, 4  ;;  %s367_s18 = int_to_ptr.vmem [resolvable:$true] %s366_s18 }
  0x15   : > { %p4179_p9 = pneg %p4619_p8  ;;  %s4633_s20 = sadd.s32 1, %s4495_s28  }
  0x16   : > { %5733 = sst [smem:[#allocation13_spill]] %s4633_s20  ;;  %s37_s21 = sadd.s32 1, %s4491_s27 }
  0x17   : > { %p4628_p11 = pnand %p4179_p9, %p5714_p1  ;;  %s34_s22 = ssub.s32 %s4495_s28, %s4633_s20 }
  0x18   : > { %s4384_s23 = scalar_lea.vmem %s367_s18, 9216  ;;  %p4392_p5 = scmp.lt.s32.totalorder %s367_s18, %s367_s18 }
  0x19   : > { %p4375_p12 = pneg %p4628_p11  ;;  %p4385_p13 = scmp.ne.s32.totalorder %s367_s18, %s4384_s23 }
  0x1a   : > { %p4393_p7 = scmp.lt.s32.totalorder %s4384_s23, %s4384_s23 }
  0x1b   : > { %p4387_p0 = pnand %p4385_p13, %p4375_p12 }
  0x1c   : > { %p4394_p10 = por %p4393_p7, %p4392_p5 }
  0x1d   : > { %p4388_p3 = pneg %p4387_p0 }
  0x1f   : > { %p4395_p2 = pnand %p4394_p10, %p4388_p3 }
  0x21   : > { %4398 = shalt.err (!%p4395_p2)
}
  0x22   : > { %s4498_s24 = smov 64   ;;  %s4499_s30 = smov 4  }
  0x23   : > { %s5734_s6 = sld [smem:[#allocation23_spill]]  ;;  %p35_p9 = scmp.eq.s32.totalorder %s34_s22, 0 }
  0x24   : > { %p44_p12 = scmp.ne.s32.totalorder %s4491_s27, %s4487_s26  ;;  %p45_p10 = scmp.eq.s32.totalorder %s4495_s28, 0 }
  0x25   : > { %p4192_p2 = scmp.lt.s32.totalorder %s4495_s28, 2  ;;  %p5735_p0 = scmp.eq.s32.totalorder %s4600_s29, 1 }
  0x26   : > { %s4650_s23 = scalar_select %p35_p9, %s4491_s27, %s37_s21  }
  0x27   : > { %p46_p13 = por %p45_p10, %p44_p12  ;;  %p4654_p3 = por %p5735_p0, %p44_p12 }
  0x28   : > { %s398_s25 = sand.u32 1, %s4491_s27   ;;  %s3437_s13 = sshll.u32 %s4495_s28, 10 }
  0x29   : > { %4182 = dma.hbm_to_vmem [thread:$0]  (!%p4628_p11), %s5734_s6, 9216, %s367_s18, [#allocation6], %s4498_s24, %s4498_s24, %s4499_s30  }
  0x2a   : > { %s5736_s15 = scalar_select %p4654_p3, 1, 0 }
  0x2b   : > { %s3250_s12 = sshll.u32 %s398_s25, 6  ;;  %s4663_s20 = scalar_lea.hbm %s5693_s0, %s3437_s13 }
  0x2c   : > { %s402_s18 = scalar_lea.vmem [#allocation2], %s3250_s12  ;;  %p4665_p11 = pnand %p4192_p2, %p46_p13 }
  0x2d   : > { %s409_s21 = sshll.u32 %s402_s18, 4  ;;  %s4671_s24 = scalar_lea.sflag [#allocation3], %s398_s25  ;;  %s4669_s21 = int_to_ptr.vmem [resolvable:$true] %s409_s21 }
  0x2e   : > { %s4399_s30 = scalar_lea.hbm %s4663_s20, 1024  ;;  %p4401_p7 = pneg %p4665_p11 }
  0x2f   : > { %p4400_p5 = scmp.ne.s32.totalorder %s4663_s20, %s4399_s30  ;;  %s4404_s12 = scalar_lea.hbm %s5693_s0, 2048 }
  0x30   : > { %p4405_p10 = scmp.lt.s32.totalorder %s4663_s20, %s5693_s0  ;;  %p4406_p2 = scmp.lt.s32.totalorder %s4404_s12, %s4399_s30 }
  0x31   : > { %p4402_p9 = pnand %p4401_p7, %p4400_p5 }
  0x32   : > { %p4407_p13 = por %p4406_p2, %p4405_p10 }
  0x33   : > { %p4403_p12 = pneg %p4402_p9 }
  0x35   : > { %p4408_p0 = pnand %p4407_p13, %p4403_p12 }
  0x37   : > { %4411 = shalt.err (!%p4408_p0)
}
  0x38   : > { %s4412_s25 = scalar_lea.vmem %s4669_s21, 1024  ;;  %s4500_s18 = smov [#allocation2]  }
  0x39   : > { %p4413_p1 = scmp.ne.s32.totalorder %s4669_s21, %s4412_s25  ;;  %s4417_s6 = sshll.u32 %s4500_s18, 4  ;;  %s4418_s6 = int_to_ptr.vmem [resolvable:$false] %s4417_s6 }
  0x3a   : > { %s4419_s11 = scalar_lea.vmem %s4418_s6, 2048  ;;  %p4420_p9 = scmp.lt.s32.totalorder %s4669_s21, %s4418_s6 }
  0x3b   : > { %p4415_p6 = pnand %p4413_p1, %p4401_p7  ;;  %p4421_p3 = scmp.lt.s32.totalorder %s4419_s11, %s4412_s25 }
  0x3d   : > { %p4416_p5 = pneg %p4415_p6  ;;  %p4422_p4 = por %p4421_p3, %p4420_p9 }
  0x3f   : > { %p4423_p8 = pnand %p4422_p4, %p4416_p5 }
  0x41   : > { %4426 = shalt.err (!%p4423_p8)
}
  0x42   : > { %s4501_s30 = smov 128   ;;  %s4502_s13 = smov 8  }
  0x43   : > { %4186 = dma.hbm_to_vmem [thread:$0]  (!%p4665_p11), %s4663_s20, 1024, %s4669_s21, %s4671_s24, %s4501_s30, %s4501_s30, %s4502_s13  }
  0x44   : > { %p5738_p1 = scmp.ne.s32.totalorder %s5731_s16, 0 }
  0x46   : > { %421 = sbr.rel (%p5738_p1) target bundleno = 2911 (0xb5f), region = 72 }
  0x4b   : > { %s4695_s12 = sand.u32 1, %s4487_s26   ;;  %p5739_p4 = scmp.ne.s32.totalorder %s5728_s14, 0 }
  0x4c   : > { %s3254_s6 = sshll.u32 %s4695_s12, 6  ;;  %s424_s17 = scalar_lea.sflag [#allocation3], %s4695_s12 }
  0x4d   : > { %s4701_s19 = scalar_lea.vmem [#allocation2], %s3254_s6 }
  0x4e   : > { %4470 = dma.done.wait (%p5739_p4), %s424_s17, 1024  }
  0x4f   : > { %4472 = vsyncadd (%p5739_p4), %s424_s17, 4294966272  ;;  %p5740_p6 = scmp.eq.s32.totalorder %s4600_s29, 0 }
  0x51   : > { %4474 = dma.done.wait (%p5740_p6), [#allocation6], 9216   ;;  %p5741_p8 = pmov %p5740_p6 }
  0x52   : > { %v4237_v0 = vld [vmem:[%s5694_s1 + $0x38] sm:$0xff]   ;;  %v4238_v1 = vld [vmem:[%s5694_s1 + $0x30] sm:$0xff]   ;;  %v4239_v2 = vld [vmem:[%s5694_s1 + $0x28] sm:$0xff]   ;;  %v5718_v20 = vmov 0.0   ;;  %vm4504_vm0 = vmmov 0   ;;  %vm746_vm1 = vcmask 1041408  }
  0x53   : > { %4476 = vsyncadd (%p5741_p8), [#allocation6], 4294958080  ;;  %3680 = vmatprep.subr.bf16.mxu0 %v4237_v0  ;;  %v4240_v3 = vld [vmem:[%s5694_s1 + $0x20] sm:$0xff]   ;;  %v476_v5 = vld [vmem:[%s4701_s19 + $0x8] sm:$0xff]  ;;  %3704 = vmatprep.subr.mxu1 %v5718_v20  ;;  %vm742_vm2 = vcmask 15360   ;;  %vm4505_vm5 = vmmov 1  }
  0x54   : > { %3681 = vmatpush3.bf16.msra.mxu0 %v4237_v0  ;;  %v475_v4 = vld [vmem:[%s4701_s19] sm:$0xff]  ;;  %v4241_v7 = vld [vmem:[%s5694_s1 + $0x18] sm:$0xff]   ;;  %v4242_v8 = vld [vmem:[%s5694_s1 + $0x10] sm:$0xff]   ;;  %3736 = vmatprep.mubr.msk.f32.mxu1 %vm4504_vm0, %v5718_v20  ;;  %s5767_s21 = sld [smem:[#allocation24_spill]]  ;;  %vm2954_vm14 = vcmask 80896   ;;  %s3438_s11 = sshll.u32 %s4600_s29, 10 }
  0x55   : > { %3682 = vmatprep.subr.bf16.mxu0 %v4238_v1  ;;  %v499_v6 = vpack.c.bf16 %v476_v5, %v475_v4  ;;  %v4243_v9 = vld [vmem:[%s5694_s1 + $0x8] sm:$0xff]   ;;  %v4244_v10 = vld [vmem:[%s5694_s1] sm:$0xff]   ;;  %v477_v11 = vld [vmem:[%s4701_s19 + $0x10] sm:$0xff]  ;;  %s5768_s18 = sld [smem:[#allocation25_spill]]  ;;  %s5626_s30 = scalar_lea.vmem [#allocation7], %s3254_s6 }
  0x56   : > { %v478_v12 = vld [vmem:[%s4701_s19 + $0x18] sm:$0xff]  ;;  %v479_v13 = vld [vmem:[%s4701_s19 + $0x20] sm:$0xff]  ;;  %v480_v14 = vld [vmem:[%s4701_s19 + $0x28] sm:$0xff]  ;;  %s3163_s13 = sshll.u32 %s5626_s30, 4  ;;  %s5769_s17 = sld [smem:[#allocation26_spill]]  ;;  %s5642_s13 = int_to_ptr.vmem [resolvable:$true] %s3163_s13 }
  0x57   : > { %3696 = vmatprep.mubr.bf16.mxu0 %v499_v6  ;;  %v500_v15 = vpack.c.bf16 %v478_v12, %v477_v11  ;;  %v501_v16 = vpack.c.bf16 %v480_v14, %v479_v13  ;;  %v481_v17 = vld [vmem:[%s4701_s19 + $0x30] sm:$0xff]  ;;  %v482_v18 = vld [vmem:[%s4701_s19 + $0x38] sm:$0xff]  ;;  %v4762_v23 = vld [vmem:[%s5696_s3 + $0x68] sm:$0xff]  ;;  %s4427_s20 = scalar_lea.vmem %s5642_s13, 1024  ;;  %p5770_p11 = scmp.ne.s32.totalorder %s5736_s15, 0 }
  0x58   : > { %3683 = vmatpush3.bf16.msra.mxu0 %v4238_v1  ;;  %v502_v19 = vpack.c.bf16 %v482_v18, %v481_v17  ;;  %v4747_v21 = vld [vmem:[%s5696_s3 + $0x78] sm:$0xff]  ;;  %v4755_v22 = vld [vmem:[%s5696_s3 + $0x70] sm:$0xff]  ;;  %v4769_v24 = vld [vmem:[%s5696_s3 + $0x60] sm:$0xff]  ;;  %p4428_p3 = scmp.ne.s32.totalorder %s5642_s13, %s4427_s20  ;;  %s4506_s22 = smov [#allocation7]  }
  0x59   : > { %3684 = vmatprep.subr.bf16.mxu0 %v4239_v2  ;;  %3705 = vmatpush3.msra.mxu1 %v4747_v21  ;;  %v4776_v25 = vld [vmem:[%s5696_s3 + $0x58] sm:$0xff]  ;;  %v4783_v26 = vld [vmem:[%s5696_s3 + $0x50] sm:$0xff]  ;;  %v4790_v27 = vld [vmem:[%s5696_s3 + $0x48] sm:$0xff]  ;;  %s4431_s14 = sshll.u32 %s4506_s22, 4  ;;  %s4432_s14 = int_to_ptr.vmem [resolvable:$false] %s4431_s14 }
  0x5a   : > { %3706 = vmatprep.subr.mxu1 %v5718_v20  ;;  %v4797_v28 = vld [vmem:[%s5696_s3 + $0x40] sm:$0xff]  ;;  %v4804_v29 = vld [vmem:[%s5696_s3 + $0x38] sm:$0xff]  ;;  %v4811_v30 = vld [vmem:[%s5696_s3 + $0x30] sm:$0xff]  ;;  %p4429_p7 = pnand %p4428_p3, %p5770_p11  ;;  %s4433_s24 = scalar_lea.vmem %s4432_s14, 2048 }
  0x5b   : > { %3707 = vmatpush3.msra.mxu1 %v4755_v22  ;;  %v4816_v31 = vld [vmem:[%s5696_s3 + $0x28] sm:$0xff]  ;;  %v4825_v32 = vld [vmem:[%s5696_s3 + $0x20] sm:$0xff]  ;;  %v4834_v33 = vld [vmem:[%s5696_s3 + $0x18] sm:$0xff]  ;;  %p4434_p10 = scmp.lt.s32.totalorder %s5642_s13, %s4432_s14  ;;  %p4435_p2 = scmp.lt.s32.totalorder %s4433_s24, %s4427_s20 }
  0x5c   : > { %3685 = vmatpush3.bf16.msra.mxu0 %v4239_v2  ;;  %3708 = vmatprep.subr.mxu1 %v5718_v20  ;;  %v4841_v34 = vld [vmem:[%s5696_s3 + $0x10] sm:$0xff]  ;;  %v4848_v35 = vld [vmem:[%s5696_s3 + $0x8] sm:$0xff]  ;;  %v4855_v36 = vld [vmem:[%s5696_s3] sm:$0xff]  ;;  %s5640_s16 = scalar_lea.hbm %s5769_s17, %s3438_s11  ;;  %p4430_p12 = pneg %p4429_p7 }
  0x5d   : > { %3686 = vmatprep.subr.bf16.mxu0 %v4240_v3  ;;  %3709 = vmatpush3.msra.mxu1 %v4762_v23  ;;  %v3257_v40 = vld [vmem:[%s5695_s2] ss:$0 sm:$0xff]  ;;  %v651_v12 = vld [vmem:[%s5698_s5 + $0x58] sm:$0xff]  ;;  %v650_v13 = vld [vmem:[%s5698_s5 + $0x50] sm:$0xff]  ;;  %p4436_p13 = por %p4435_p2, %p4434_p10 }
  0x5e   : > { %3710 = vmatprep.subr.mxu1 %v5718_v20  ;;  %v4891_v4 = vld [vmem:[%s5697_s4] sm:$0x3]  ;;  %v649_v14 = vld [vmem:[%s5698_s5 + $0x48] sm:$0xff]  ;;  %v646_v17 = vld [vmem:[%s5698_s5 + $0x30] sm:$0xff] }
  0x5f   : > { %3711 = vmatpush3.msra.mxu1 %v4769_v24  ;;  %v652_v11 = vld [vmem:[%s5698_s5 + $0x60] sm:$0xff]  ;;  %v645_v18 = vld [vmem:[%s5698_s5 + $0x28] sm:$0xff]  ;;  %p4437_p0 = pnand %p4436_p13, %p4430_p12 }
  0x60   : > { %3687 = vmatpush3.bf16.msra.mxu0 %v4240_v3  ;;  %3712 = vmatprep.subr.mxu1 %v5718_v20 }
  0x61   : > { %3688 = vmatprep.subr.bf16.mxu0 %v4241_v7  ;;  %3713 = vmatpush3.msra.mxu1 %v4776_v25 }
  0x62   : > { %3714 = vmatprep.subr.mxu1 %v5718_v20 }
  0x63   : > { %3715 = vmatpush3.msra.mxu1 %v4783_v26 }
  0x64   : > { %3689 = vmatpush3.bf16.msra.mxu0 %v4241_v7  ;;  %3716 = vmatprep.subr.mxu1 %v5718_v20 }
  0x65   : > { %3690 = vmatprep.subr.bf16.mxu0 %v4242_v8  ;;  %3717 = vmatpush3.msra.mxu1 %v4790_v27 }
  0x66   : > { %3718 = vmatprep.subr.mxu1 %v5718_v20 }
  0x67   : > { %3719 = vmatpush3.msra.mxu1 %v4797_v28 }
  0x68   : > { %3691 = vmatpush3.bf16.msra.mxu0 %v4242_v8  ;;  %3720 = vmatprep.subr.mxu1 %v5718_v20  ;;  %v655_v8 = vld [vmem:[%s5698_s5 + $0x78] sm:$0xff] }
  0x69   : > { %3692 = vmatprep.subr.bf16.mxu0 %v4243_v9  ;;  %3721 = vmatpush3.msra.mxu1 %v4804_v29 }
  0x6a   : > { %3722 = vmatprep.subr.mxu1 %v5718_v20 }
  0x6b   : > { %3723 = vmatpush3.msra.mxu1 %v4811_v30 }
  0x6c   : > { %3693 = vmatpush3.bf16.msra.mxu0 %v4243_v9  ;;  %3724 = vmatprep.subr.mxu1 %v5718_v20  ;;  %v654_v9 = vld [vmem:[%s5698_s5 + $0x70] sm:$0xff] }
  0x6d   : > { %3694 = vmatprep.subr.bf16.mxu0 %v4244_v10  ;;  %3725 = vmatpush3.msra.mxu1 %v4816_v31 }
  0x6e   : > { %3726 = vmatprep.subr.mxu1 %v5718_v20 }
  0x6f   : > { %3727 = vmatpush3.msra.mxu1 %v4825_v32 }
  0x70   : > { %3695 = vmatpush3.bf16.msra.mxu0 %v4244_v10  ;;  %3728 = vmatprep.subr.mxu1 %v5718_v20  ;;  %v653_v10 = vld [vmem:[%s5698_s5 + $0x68] sm:$0xff] }
  0x71   : > { %3744 = vmatprep.subr.mxu0 %v5718_v20  ;;  %3729 = vmatpush3.msra.mxu1 %v4834_v33 }
  0x72   : > { %3730 = vmatprep.subr.mxu1 %v5718_v20 }
  0x73   : > { %3697 = vmatmul.mubr.bf16.vlgmr.msra.gmra.mxu0 %v500_v15  ;;  %3731 = vmatpush3.msra.mxu1 %v4841_v34  ;;  %v648_v15 = vld [vmem:[%s5698_s5 + $0x40] sm:$0xff] }
  0x74   : > { %3700 = vmatprep.mubr.bf16.mxu0 %v501_v16  ;;  %3732 = vmatprep.subr.mxu1 %v5718_v20  ;;  %v647_v16 = vld [vmem:[%s5698_s5 + $0x38] sm:$0xff] }
  0x75   : > { %3733 = vmatpush3.msra.mxu1 %v4848_v35  ;;  %3745 = vmatpush3.msra.mxu0 %v655_v8  ;;  %v4261_v8 = vld [vmem:[#allocation5 + $0xb8] sm:$0xff]  }
  0x76   : > { %3734 = vmatprep.subr.mxu1 %v5718_v20  ;;  %3746 = vmatprep.subr.mxu0 %v5718_v20 }
  0x77   : > { %3735 = vmatpush3.msra.mxu1 %v4855_v36  ;;  %3747 = vmatpush3.msra.mxu0 %v654_v9  ;;  %v4961_v9 = vld [vmem:[#allocation5 + $0xf8] sm:$0xff]  }
  0x78   : > { %3739 = vmatprep.subr.mxu1 %v5718_v20  ;;  %3748 = vmatprep.subr.mxu0 %v5718_v20 }
  0x79   : > { %3749 = vmatpush3.msra.mxu0 %v653_v10 }
  0x7a   : > { %3750 = vmatprep.subr.mxu0 %v5718_v20 }
  0x7b   : > { %3701 = vmatmul.mubr.bf16.gmra.mxu0 %v502_v19  ;;  %v644_v19 = vld [vmem:[%s5698_s5 + $0x20] sm:$0xff] }
  0x7c   : > { %3776 = vmatprep.mubr.msk.f32.mxu0 %vm4504_vm0, %v5718_v20  ;;  %3751 = vmatpush3.msra.mxu0 %v652_v11 }
  0x7d   : > { %3752 = vmatprep.subr.mxu0 %v5718_v20 }
  0x7e   : > { %3753 = vmatpush3.msra.mxu0 %v651_v12 }
  0x7f   : > { %3754 = vmatprep.subr.mxu0 %v5718_v20 }
  0x80   : > { %3755 = vmatpush3.msra.mxu0 %v650_v13 }
  0x81   : > { %3756 = vmatprep.subr.mxu0 %v5718_v20 }
  0x82   : > { %3757 = vmatpush3.msra.mxu0 %v649_v14 }
  0x83   : > { %3758 = vmatprep.subr.mxu0 %v5718_v20 }
  0x84   : > { %3759 = vmatpush3.msra.mxu0 %v648_v15  ;;  %v902_v15 = vlaneseq }
  0x85   : > { %3760 = vmatprep.subr.mxu0 %v5718_v20 }
  0x86   : > { %3761 = vmatpush3.msra.mxu0 %v647_v16  ;;  %v4964_v16 = vshrl.u32 %v902_v15, 7  ;;  %v4265_v15 = vld [vmem:[#allocation5 + $0xa8] sm:$0xff]  }
  0x87   : > { %3762 = vmatprep.subr.mxu0 %v5718_v20 }
  0x88   : > { %3763 = vmatpush3.msra.mxu0 %v646_v17  ;;  %v4967_v17 = vsub.s32 0, %v4964_v16  ;;  %vm939_vm3 = vcmp.lt.s32.totalorder %v4964_v16, 1  ;;  %vm1286_vm8 = vcmp.lt.s32.totalorder %v4964_v16, 7 }
  0x89   : > { %3764 = vmatprep.subr.mxu0 %v5718_v20 }
  0x8a   : > { %3765 = vmatpush3.msra.mxu0 %v645_v18  ;;  %5742 = vst [vmem:[#allocation14_spill] sm:$0xff] %v4967_v17  ;;  %v4970_v18 = vadd.s32 4294967295, %v4964_v16 }
  0x8b   : > { %3766 = vmatprep.subr.mxu0 %v5718_v20 }
  0x8c   : > { %3767 = vmatpush3.msra.mxu0 %v644_v19  ;;  %vm973_vm4 = vcmp.ge.s32.totalorder %v4970_v18, 0  ;;  %v4313_v18 = vld [vmem:[#allocation5 + $0x218] sm:$0xff]  }
  0x8d   : > { %3768 = vmatprep.subr.mxu0 %v5718_v20  ;;  %vm3286_vm6 = vmpackc.low %vm973_vm4, %vm4505_vm5 }
  0x8e   : > { %vm5039_vm7 = vmpackc.low %vm973_vm4, %vm973_vm4 }
  0x8f   : > { %vm3383_vm12 = vmpackc.low %vm4505_vm5, %vm973_vm4 }
 0x133   : > { %v3698_v37 = vpop.f32.mrf.mxu0 }
 0x134   : > { %v4868_v45 = vadd.f32 %v3698_v37, %v3257_v40  ;;  %v643_v37 = vld [vmem:[%s5698_s5 + $0x18] sm:$0xff] }
 0x135   : > { %v592_v38 = vpop.f32.mrf.mxu0  ;;  %3769 = vmatpush3.msra.mxu0 %v643_v37 }
 0x136   : > { %v4864_v42 = vadd.f32 %v3257_v40, %v592_v38  ;;  %v642_v38 = vld [vmem:[%s5698_s5 + $0x10] sm:$0xff]  ;;  %3770 = vmatprep.subr.mxu0 %v5718_v20 }
 0x137   : > { %v3699_v39 = vpop.f32.mrf.mxu0  ;;  %3771 = vmatpush3.msra.mxu0 %v642_v38 }
 0x138   : > { %v4872_v48 = vadd.f32 %v3699_v39, %v3257_v40  ;;  %v641_v39 = vld [vmem:[%s5698_s5 + $0x8] sm:$0xff]  ;;  %3772 = vmatprep.subr.mxu0 %v5718_v20 }
 0x139   : > { %v595_v41 = vpop.f32.mrf.mxu0  ;;  %3773 = vmatpush3.msra.mxu0 %v641_v39 }
 0x13a   : > { %v4866_v43 = vadd.f32 %v3257_v40, %v595_v41  ;;  %3774 = vmatprep.subr.mxu0 %v5718_v20 }
 0x13b   : > { %v3702_v44 = vpop.f32.mrf.mxu0 }
 0x13c   : > { %v656_v46 = vadd.f32 %v4866_v43, %v4864_v42  ;;  %v4881_v56 = vadd.f32 %v3702_v44, %v3257_v40 }
 0x13d   : > { %v608_v47 = vpop.f32.mrf.mxu0 }
 0x13e   : > { %v657_v49 = vadd.f32 %v656_v46, %v4868_v45  ;;  %v4875_v51 = vadd.f32 %v3257_v40, %v608_v47 }
 0x13f   : > { %v3703_v50 = vpop.f32.mrf.mxu0 }
 0x140   : > { %v658_v52 = vadd.f32 %v657_v49, %v4872_v48  ;;  %v4884_v58 = vadd.f32 %v3703_v50, %v3257_v40 }
 0x141   : > { %v611_v53 = vpop.f32.mrf.mxu0 }
 0x142   : > { %v659_v54 = vadd.f32 %v658_v52, %v4875_v51  ;;  %v4879_v55 = vadd.f32 %v3257_v40, %v611_v53  ;;  %v640_v40 = vld [vmem:[%s5698_s5] sm:$0xff]  ;;  %v4245_v52 = vld [vmem:[#allocation5 + $0x78] sm:$0xff]  }
 0x143   : > { %3775 = vmatpush3.msra.mxu0 %v640_v40  ;;  %v4246_v53 = vld [vmem:[#allocation5 + $0x38] sm:$0xff]  }
 0x144   : > { %v660_v57 = vadd.f32 %v659_v54, %v4879_v55  ;;  %v4247_v54 = vld [vmem:[#allocation5 + $0x70] sm:$0xff]   ;;  %3803 = vmatprep.subr.bf16.mxu0 %v4246_v53 }
 0x146   : > { %v661_v59 = vadd.f32 %v660_v57, %v4881_v56  ;;  %v4248_v57 = vld [vmem:[#allocation5 + $0x30] sm:$0xff]  }
 0x148   : > { %v662_v60 = vadd.f32 %v661_v59, %v4884_v58  ;;  %v4249_v59 = vld [vmem:[#allocation5 + $0x68] sm:$0xff]  }
 0x14a   : > { %v663_v61 = vrot.slane %v662_v60, 4 }
 0x14c   : > { %v664_v62 = vadd.f32 %v663_v61, %v662_v60  ;;  %v4250_v60 = vld [vmem:[#allocation5 + $0x28] sm:$0xff]   ;;  %v4251_v61 = vld [vmem:[#allocation5 + $0x60] sm:$0xff]  }
 0x14e   : > { %v665_v63 = vrot.slane %v664_v62, 2 }
 0x150   : > { %v666_v0 = vadd.f32 %v665_v63, %v664_v62  ;;  %v4252_v62 = vld [vmem:[#allocation5 + $0x20] sm:$0xff]   ;;  %v4253_v63 = vld [vmem:[#allocation5 + $0x58] sm:$0xff]  }
 0x152   : > { %v667_v1 = vrot.slane %v666_v0, 1 }
 0x154   : > { %v668_v2 = vadd.f32 %v667_v1, %v666_v0  ;;  %v4254_v0 = vld [vmem:[#allocation5 + $0x18] sm:$0xff]   ;;  %v4255_v1 = vld [vmem:[#allocation5 + $0x50] sm:$0xff]  }
 0x156   : > { %v670_v3 = vmul.f32 0.015625, %v668_v2  ;;  %v4256_v2 = vld [vmem:[#allocation5 + $0x10] sm:$0xff]  }
 0x158   : > { %3737 = vmatmul.mubr.f32.vlgmr.msra.gmra.mxu1 %v670_v3  ;;  %v4257_v3 = vld [vmem:[#allocation5 + $0x48] sm:$0xff]  }
 0x159   : > { %3740 = vmatpush3.msk.msra.mxu1 %vm746_vm1, %v4891_v4  ;;  %3741 = vmatprep.mubr.msk.f32.mxu1 %vm4504_vm0, %v5718_v20 }
 0x15a   : > { %3779 = vmatprep.subr.bf16.mxu1 %v4245_v52 }
 0x218   : > { %v737_v5 = vpop.f32.mrf.mxu1 }
 0x219   : > { %v741_v6 = vmax.f32 %v737_v5, 0.0  ;;  %v4258_v5 = vld [vmem:[#allocation5 + $0x8] sm:$0xff]  }
 0x21a   : > { %v3738_v7 = vpop.f32.mrf.mxu1 }
 0x21b   : > { %3742 = vmatmul.mubr.msk.f32.vlgmr.msra.gmra.mxu1 %vm742_vm2, %v741_v6  ;;  %v4259_v6 = vld [vmem:[#allocation5 + $0x40] sm:$0xff]  }
 0x21c   : > { %3780 = vmatpush3.bf16.msra.mxu1 %v4245_v52  ;;  %v4260_v7 = vld [vmem:[#allocation5] sm:$0xff]  }
 0x21d   : > { %3781 = vmatprep.subr.bf16.mxu1 %v4247_v54 }
 0x220   : > { %3782 = vmatpush3.bf16.msra.mxu1 %v4247_v54 }
 0x221   : > { %3783 = vmatprep.subr.bf16.mxu1 %v4249_v59 }
 0x224   : > { %3784 = vmatpush3.bf16.msra.mxu1 %v4249_v59 }
 0x225   : > { %3785 = vmatprep.subr.bf16.mxu1 %v4251_v61 }
 0x228   : > { %3786 = vmatpush3.bf16.msra.mxu1 %v4251_v61 }
 0x229   : > { %3787 = vmatprep.subr.bf16.mxu1 %v4253_v63 }
 0x22c   : > { %3788 = vmatpush3.bf16.msra.mxu1 %v4253_v63 }
 0x22d   : > { %3789 = vmatprep.subr.bf16.mxu1 %v4255_v1 }
 0x230   : > { %3790 = vmatpush3.bf16.msra.mxu1 %v4255_v1 }
 0x231   : > { %3791 = vmatprep.subr.bf16.mxu1 %v4257_v3 }
 0x234   : > { %3792 = vmatpush3.bf16.msra.mxu1 %v4257_v3 }
 0x235   : > { %3793 = vmatprep.subr.bf16.mxu1 %v4259_v6 }
 0x238   : > { %3794 = vmatpush3.bf16.msra.mxu1 %v4259_v6 }
 0x239   : > { %3827 = vmatprep.subr.bf16.mxu1 %v4261_v8 }
 0x2db   : > { %v816_v41 = vpop.f32.mrf.mxu1 }
 0x2dc   : > { %v3268_v44 = vmul.f32 -1.442695, %v816_v41 }
 0x2dd   : > { %v3743_v46 = vpop.f32.mrf.mxu1 }
 0x2de   : > { %4325 = vpow2.f32 %v3268_v44 }
 0x2eb   : > { %v4326_v47 = vpop.eup %4325 }
 0x2ec   : > { %v823_v49 = vadd.f32 1.0, %v4326_v47 }
 0x2ee   : > { %4327 = vrcp.f32 %v823_v49 }
 0x2fb   : > { %v4328_v50 = vpop.eup %4327 }
 0x2fc   : > { %3777 = vmatmul.mubr.f32.vlgmr.msra.gmra.mxu0 %v4328_v50 }
 0x2fd   : > { %3804 = vmatpush3.bf16.msra.mxu0 %v4246_v53 }
 0x2fe   : > { %3805 = vmatprep.subr.bf16.mxu0 %v4248_v57 }
 0x301   : > { %3806 = vmatpush3.bf16.msra.mxu0 %v4248_v57 }
 0x302   : > { %3807 = vmatprep.subr.bf16.mxu0 %v4250_v60 }
 0x305   : > { %3808 = vmatpush3.bf16.msra.mxu0 %v4250_v60  ;;  %v4263_v60 = vld [vmem:[#allocation5 + $0xb0] sm:$0xff]  }
 0x306   : > { %3809 = vmatprep.subr.bf16.mxu0 %v4252_v62 }
 0x309   : > { %3810 = vmatpush3.bf16.msra.mxu0 %v4252_v62 }
 0x30a   : > { %3811 = vmatprep.subr.bf16.mxu0 %v4254_v0 }
 0x30d   : > { %3812 = vmatpush3.bf16.msra.mxu0 %v4254_v0 }
 0x30e   : > { %3813 = vmatprep.subr.bf16.mxu0 %v4256_v2 }
 0x311   : > { %3814 = vmatpush3.bf16.msra.mxu0 %v4256_v2 }
 0x312   : > { %3815 = vmatprep.subr.bf16.mxu0 %v4258_v5 }
 0x315   : > { %3816 = vmatpush3.bf16.msra.mxu0 %v4258_v5 }
 0x316   : > { %3817 = vmatprep.subr.bf16.mxu0 %v4260_v7 }
 0x319   : > { %3818 = vmatpush3.bf16.msra.mxu0 %v4260_v7 }
 0x31a   : > { %3851 = vmatprep.subr.bf16.mxu0 %v4961_v9 }
 0x3bc   : > { %v892_v10 = vpop.f32.mrf.mxu0 }
 0x3bd   : > { %v3269_v11 = vmul.f32 -1.442695, %v892_v10 }
 0x3be   : > { %v3778_v12 = vpop.f32.mrf.mxu0 }
 0x3bf   : > { %4329 = vpow2.f32 %v3269_v11 }
 0x3cc   : > { %v4330_v13 = vpop.eup %4329 }
 0x3cd   : > { %v899_v14 = vadd.f32 1.0, %v4330_v13  ;;  %v4264_v13 = vld [vmem:[#allocation5 + $0xf0] sm:$0xff]  }
 0x3cf   : > { %4331 = vrcp.f32 %v899_v14 }
 0x3dc   : > { %v4332_v19 = vpop.eup %4331 }
 0x3dd   : > { %v905_v37 = vrot.slane %v4332_v19, %v4967_v17 }
 0x3df   : > { %v906_v38 = vmul.f32 %v905_v37, %v4864_v42  ;;  %v907_v39 = vmul.f32 %v905_v37, %v4866_v43  ;;  %v908_v40 = vmul.f32 %v905_v37, %v4868_v45  ;;  %v909_v41 = vmul.f32 %v905_v37, %v4872_v48 }
 0x3e0   : > { %v910_v44 = vmul.f32 %v905_v37, %v4875_v51  ;;  %v913_v46 = vmul.f32 %v905_v37, %v4884_v58  ;;  %v911_v47 = vmul.f32 %v905_v37, %v4879_v55  ;;  %v912_v49 = vmul.f32 %v905_v37, %v4881_v56 }
 0x3e1   : > { %v4983_v50 = vmax.f32 %v906_v38, 0.0  ;;  %v4985_v52 = vmax.f32 %v907_v39, 0.0  ;;  %v4987_v53 = vmax.f32 %v908_v40, 0.0  ;;  %v4989_v42 = vmax.f32 %v909_v41, 0.0  ;;  %v4266_v40 = vld [vmem:[#allocation5 + $0xe8] sm:$0xff]  }
 0x3e2   : > { %v4991_v43 = vmax.f32 %v910_v44, 0.0  ;;  %v4993_v45 = vmax.f32 %v913_v46, 0.0  ;;  %v4996_v48 = vadd.s32 1, %v4964_v16  ;;  %v5005_v58 = vmax.f32 %v911_v47, 0.0  ;;  %v4267_v46 = vld [vmem:[#allocation5 + $0xa0] sm:$0xff]  }
 0x3e3   : > { %v1048_v51 = vpack.c.bf16 %v4983_v50, %v5718_v20  ;;  %v5002_v55 = vpack.c.bf16 %v4987_v53, %v4985_v52  ;;  %v931_v56 = vrot.slane %v4983_v50, 7  ;;  %v932_v57 = vrot.slane %v4985_v52, 7 }
 0x3e4   : > { %v938_v54 = vrot.slane %v4993_v45, 7  ;;  %v933_v59 = vrot.slane %v4987_v53, 7  ;;  %v5010_v61 = vmax.f32 %v912_v49, 0.0  ;;  %v5014_v62 = vpack.c.bf16 %v4991_v43, %v4989_v42 }
 0x3e5   : > { %3795 = vmatprep.mubr.bf16.mxu1 %v1048_v51  ;;  %v934_v63 = vrot.slane %v4989_v42, 7  ;;  %v935_v0 = vrot.slane %v4991_v43, 7  ;;  %v1278_v1 = vrot.slane %v4983_v50, 1  ;;  %v946_v5 = vsel %vm939_vm3, %v931_v56, %v932_v57 }
 0x3e6   : > { %3796 = vmatmul.mubr.bf16.vlgmr.msra.gmra.mxu1 %v5002_v55  ;;  %v947_v2 = vsel %vm939_vm3, %v938_v54, %v931_v56  ;;  %v5029_v3 = vsel %vm939_vm3, %v932_v57, %v933_v59  ;;  %v1279_v6 = vrot.slane %v4985_v52, 1  ;;  %vm1297_vm9 = vcmp.lt.s32.totalorder %v4996_v48, 8  ;;  %v4268_v56 = vld [vmem:[#allocation5 + $0xe0] sm:$0xff]   ;;  %v4281_v57 = vld [vmem:[#allocation5 + $0x128] sm:$0xff]  }
 0x3e7   : > { %3828 = vmatpush3.bf16.msra.mxu1 %v4261_v8  ;;  %3799 = vmatprep.mubr.bf16.mxu1 %v5014_v62  ;;  %v3287_v7 = vpack.c.bf16 %v947_v2, %v5718_v20  ;;  %v5044_v11 = vpack.c.bf16 %v5029_v3, %v946_v5  ;;  %v5048_v12 = vsel %vm939_vm3, %v934_v63, %v935_v0  ;;  %v936_v19 = vrot.slane %v5005_v58, 7  ;;  %vm3306_vm10 = vmpackc.low %vm1297_vm9, %vm4505_vm5 }
 0x3e8   : > { %3829 = vmatprep.subr.bf16.mxu1 %v4263_v60  ;;  %v5053_v8 = vsel %vm939_vm3, %v933_v59, %v934_v63  ;;  %v937_v37 = vrot.slane %v5010_v61, 7  ;;  %v5069_v38 = vsel %vm1286_vm8, %v1278_v1, %v1279_v6  ;;  %v5077_v39 = vpack.c.bf16 %v5010_v61, %v5005_v58  ;;  %vm5138_vm11 = vmpackc.low %vm1297_vm9, %vm1297_vm9 }
 0x3e9   : > { %3819 = vmatprep.mubr.msk.bf16.mxu0 %vm3286_vm6, %v3287_v7  ;;  %v5057_v14 = vpack.c.bf16 %v5048_v12, %v5053_v8  ;;  %v3307_v41 = vpack.c.bf16 %v5069_v38, %v5718_v20  ;;  %v5092_v44 = vsel %vm939_vm3, %v935_v0, %v936_v19  ;;  %v1285_v47 = vrot.slane %v4993_v45, 1  ;;  %v4270_v0 = vld [vmem:[#allocation5 + $0xd8] sm:$0xff]   ;;  %v4274_v7 = vld [vmem:[#allocation5 + $0xc8] sm:$0xff]   ;;  %vm3411_vm13 = vmpackc.low %vm4505_vm5, %vm1297_vm9 }
 0x3ea   : > { %3820 = vmatmul.mubr.msk.bf16.vlgmr.msra.gmra.mxu0 %vm5039_vm7, %v5044_v11  ;;  %v1648_v49 = vpack.c.bf16 %v4989_v42, %v4987_v53  ;;  %v3327_v59 = vpack.c.bf16 %v946_v5, %v947_v2  ;;  %v4271_v2 = vld [vmem:[#allocation5 + $0x90] sm:$0xff]   ;;  %v3333_v20 = vpack.c.bf16 %v5092_v44, %v5048_v12 }
 0x3eb   : > { %3852 = vmatpush3.bf16.msra.mxu0 %v4961_v9  ;;  %3823 = vmatprep.mubr.msk.bf16.mxu0 %vm5039_vm7, %v5057_v14  ;;  %v5088_v9 = vsel %vm939_vm3, %v936_v19, %v937_v37  ;;  %v5108_v63 = vsel %vm1286_vm8, %v1285_v47, %v1278_v1  ;;  %v4272_v5 = vld [vmem:[#allocation5 + $0xd0] sm:$0xff]   ;;  %v4273_v1 = vld [vmem:[#allocation5 + $0x88] sm:$0xff]   ;;  %v1280_v19 = vrot.slane %v4987_v53, 1 }
 0x3ec   : > { %3830 = vmatpush3.bf16.msra.mxu1 %v4263_v60  ;;  %3853 = vmatprep.subr.bf16.mxu0 %v4264_v13  ;;  %v5100_v51 = vpack.c.bf16 %v5088_v9, %v5092_v44  ;;  %v4269_v60 = vld [vmem:[#allocation5 + $0x98] sm:$0xff]   ;;  %v5184_v44 = vsel %vm939_vm3, %v937_v37, %v938_v54  ;;  %v4288_v37 = vld [vmem:[#allocation5 + $0x150] sm:$0xff]   ;;  %v4298_v53 = vld [vmem:[#allocation5 + $0x1e8] sm:$0xff]  }
 0x3ed   : > { %3831 = vmatprep.subr.bf16.mxu1 %v4265_v15  ;;  %v4285_v54 = vld [vmem:[#allocation5 + $0x118] sm:$0xff]  }
 0x3ee   : > { %3800 = vmatmul.mubr.bf16.gmra.mxu1 %v5077_v39 }
 0x3ef   : > { %3854 = vmatpush3.bf16.msra.mxu0 %v4264_v13  ;;  %3843 = vmatprep.mubr.msk.bf16.mxu1 %vm3306_vm10, %v3307_v41  ;;  %v4275_v13 = vld [vmem:[#allocation5 + $0x80] sm:$0xff]   ;;  %v1283_v41 = vrot.slane %v5005_v58, 1 }
 0x3f0   : > { %3832 = vmatpush3.bf16.msra.mxu1 %v4265_v15  ;;  %3855 = vmatprep.subr.bf16.mxu0 %v4266_v40  ;;  %v1281_v15 = vrot.slane %v4989_v42, 1  ;;  %v4299_v42 = vld [vmem:[#allocation5 + $0x1a0] sm:$0xff]  }
 0x3f1   : > { %3833 = vmatprep.subr.bf16.mxu1 %v4267_v46 }
 0x3f2   : > { %3824 = vmatmul.mubr.msk.bf16.gmra.mxu0 %vm5039_vm7, %v5100_v51 }
 0x3f3   : > { %3856 = vmatpush3.bf16.msra.mxu0 %v4266_v40  ;;  %3867 = vmatprep.mubr.msk.bf16.mxu0 %vm5039_vm7, %v3327_v59  ;;  %v1282_v40 = vrot.slane %v4991_v43, 1  ;;  %v1292_v59 = vsel %vm1286_vm8, %v1279_v6, %v1280_v19 }
 0x3f4   : > { %3834 = vmatpush3.bf16.msra.mxu1 %v4267_v46  ;;  %3857 = vmatprep.subr.bf16.mxu0 %v4268_v56  ;;  %v4276_v46 = vld [vmem:[#allocation5 + $0xc0] sm:$0xff]   ;;  %v3355_v16 = vpack.c.bf16 %v1292_v59, %v5069_v38  ;;  %v4290_v38 = vld [vmem:[#allocation5 + $0x148] sm:$0xff]  }
 0x3f5   : > { %3835 = vmatprep.subr.bf16.mxu1 %v4269_v60 }
 0x3f7   : > { %3858 = vmatpush3.bf16.msra.mxu0 %v4268_v56  ;;  %v4277_v56 = vld [vmem:[#allocation5 + $0x138] sm:$0xff]  }
 0x3f8   : > { %3836 = vmatpush3.bf16.msra.mxu1 %v4269_v60  ;;  %3859 = vmatprep.subr.bf16.mxu0 %v4270_v0  ;;  %v5125_v60 = vsel %vm1286_vm8, %v1280_v19, %v1281_v15 }
 0x3f9   : > { %3837 = vmatprep.subr.bf16.mxu1 %v4271_v2  ;;  %v5143_v6 = vpack.c.bf16 %v5125_v60, %v1292_v59  ;;  %v4292_v59 = vld [vmem:[#allocation5 + $0x140] sm:$0xff]  }
 0x3fb   : > { %3860 = vmatpush3.bf16.msra.mxu0 %v4270_v0  ;;  %v5129_v0 = vsel %vm1286_vm8, %v1282_v40, %v1283_v41 }
 0x3fc   : > { %3838 = vmatpush3.bf16.msra.mxu1 %v4271_v2  ;;  %3861 = vmatprep.subr.bf16.mxu0 %v4272_v5  ;;  %v5133_v2 = vsel %vm1286_vm8, %v1281_v15, %v1282_v40  ;;  %v1284_v15 = vrot.slane %v5010_v61, 1  ;;  %v4280_v40 = vld [vmem:[#allocation5 + $0x170] sm:$0xff]  }
 0x3fd   : > { %3839 = vmatprep.subr.bf16.mxu1 %v4273_v1  ;;  %v5147_v19 = vpack.c.bf16 %v5129_v0, %v5133_v2 }
 0x3ff   : > { %3862 = vmatpush3.bf16.msra.mxu0 %v4272_v5 }
 0x400   : > { %3840 = vmatpush3.bf16.msra.mxu1 %v4273_v1  ;;  %3863 = vmatprep.subr.bf16.mxu0 %v4274_v7  ;;  %v4278_v1 = vld [vmem:[#allocation5 + $0x178] sm:$0xff]  }
 0x401   : > { %3841 = vmatprep.subr.bf16.mxu1 %v4275_v13 }
 0x403   : > { %3864 = vmatpush3.bf16.msra.mxu0 %v4274_v7  ;;  %v4279_v7 = vld [vmem:[#allocation5 + $0x130] sm:$0xff]  }
 0x404   : > { %3842 = vmatpush3.bf16.msra.mxu1 %v4275_v13  ;;  %3865 = vmatprep.subr.bf16.mxu0 %v4276_v46  ;;  %v3330_v13 = vpack.c.bf16 %v5053_v8, %v5029_v3  ;;  %v5166_v3 = vsel %vm1286_vm8, %v1284_v15, %v1285_v47  ;;  %v5170_v8 = vsel %vm1286_vm8, %v1283_v41, %v1284_v15  ;;  %v4282_v47 = vld [vmem:[#allocation5 + $0x168] sm:$0xff]   ;;  %v4283_v41 = vld [vmem:[#allocation5 + $0x120] sm:$0xff]   ;;  %v4295_v15 = vld [vmem:[#allocation5 + $0x1b0] sm:$0xff]  }
 0x405   : > { %3875 = vmatprep.subr.bf16.mxu1 %v4277_v56  ;;  %v5176_v12 = vpack.c.bf16 %v5166_v3, %v5170_v8 }
 0x407   : > { %3844 = vmatmul.mubr.msk.bf16.vlgmr.msra.gmra.mxu1 %vm5138_vm11, %v5143_v6  ;;  %3866 = vmatpush3.bf16.msra.mxu0 %v4276_v46  ;;  %v3336_v46 = vpack.c.bf16 %v5184_v44, %v5088_v9  ;;  %v4289_v9 = vld [vmem:[#allocation5 + $0x108] sm:$0xff]  }
 0x408   : > { %3847 = vmatprep.mubr.msk.bf16.mxu1 %vm5138_vm11, %v5147_v19  ;;  %3876 = vmatpush3.bf16.msra.mxu1 %v4277_v56  ;;  %v4284_v56 = vld [vmem:[#allocation5 + $0x160] sm:$0xff]  }
 0x409   : > { %3899 = vmatprep.subr.bf16.mxu0 %v4278_v1  ;;  %3877 = vmatprep.subr.bf16.mxu1 %v4279_v7 }
 0x40a   : > { %3868 = vmatmul.mubr.msk.bf16.vlgmr.msra.gmra.mxu0 %vm5039_vm7, %v3330_v13  ;;  %v1649_v13 = vpack.c.bf16 %v5005_v58, %v4991_v43  ;;  %v5747_v43 = vpack.c.bf16 %v4993_v45, %v5010_v61  ;;  %v3364_v58 = vpack.c.bf16 %v5108_v63, %v5166_v3  ;;  %v4302_v61 = vld [vmem:[#allocation5 + $0x1d8] sm:$0xff]   ;;  %v4306_v3 = vld [vmem:[#allocation5 + $0x1c8] sm:$0xff]  }
 0x40b   : > { %3871 = vmatprep.mubr.msk.bf16.mxu0 %vm5039_vm7, %v3333_v20  ;;  %3900 = vmatpush3.bf16.msra.mxu0 %v4278_v1  ;;  %v1647_v20 = vpack.c.bf16 %v4985_v52, %v4983_v50  ;;  %v4286_v50 = vld [vmem:[#allocation5 + $0x158] sm:$0xff]   ;;  %v4287_v52 = vld [vmem:[#allocation5 + $0x110] sm:$0xff]  }
 0x40c   : > { %3878 = vmatpush3.bf16.msra.mxu1 %v4279_v7  ;;  %3901 = vmatprep.subr.bf16.mxu0 %v4280_v40  ;;  %v4293_v1 = vld [vmem:[#allocation5 + $0x1b8] sm:$0xff]  }
 0x40d   : > { %3879 = vmatprep.subr.bf16.mxu1 %v4281_v57  ;;  %v4294_v7 = vld [vmem:[#allocation5 + $0x1f8] sm:$0xff]  }
 0x40f   : > { %3848 = vmatmul.mubr.msk.bf16.gmra.mxu1 %vm5138_vm11, %v5176_v12  ;;  %3902 = vmatpush3.bf16.msra.mxu0 %v4280_v40  ;;  %v3358_v40 = vpack.c.bf16 %v5133_v2, %v5125_v60  ;;  %v4301_v60 = vld [vmem:[#allocation5 + $0x198] sm:$0xff]   ;;  %v4305_v2 = vld [vmem:[#allocation5 + $0x188] sm:$0xff]  }
 0x410   : > { %3880 = vmatpush3.bf16.msra.mxu1 %v4281_v57  ;;  %3891 = vmatprep.mubr.bf16.mxu1 %v1647_v20  ;;  %v4291_v57 = vld [vmem:[#allocation5 + $0x100] sm:$0xff]   ;;  %v4297_v20 = vld [vmem:[#allocation5 + $0x1a8] sm:$0xff]  }
 0x411   : > { %3903 = vmatprep.subr.bf16.mxu0 %v4282_v47  ;;  %3881 = vmatprep.subr.bf16.mxu1 %v4283_v41 }
 0x412   : > { %3872 = vmatmul.mubr.msk.bf16.gmra.mxu0 %vm5039_vm7, %v3336_v46  ;;  %v4309_v46 = vld [vmem:[#allocation5 + $0x238] sm:$0xff]  }
 0x413   : > { %3904 = vmatpush3.bf16.msra.mxu0 %v4282_v47  ;;  %3915 = vmatprep.mubr.msk.bf16.mxu0 %vm5138_vm11, %v3355_v16  ;;  %v4296_v47 = vld [vmem:[#allocation5 + $0x1f0] sm:$0xff]   ;;  %v4311_v16 = vld [vmem:[#allocation5 + $0x228] sm:$0xff]  }
 0x414   : > { %3882 = vmatpush3.bf16.msra.mxu1 %v4283_v41  ;;  %3905 = vmatprep.subr.bf16.mxu0 %v4284_v56  ;;  %v3361_v41 = vpack.c.bf16 %v5170_v8, %v5129_v0  ;;  %v4303_v0 = vld [vmem:[#allocation5 + $0x190] sm:$0xff]   ;;  %v4307_v8 = vld [vmem:[#allocation5 + $0x180] sm:$0xff]  }
 0x415   : > { %3883 = vmatprep.subr.bf16.mxu1 %v4285_v54 }
 0x417   : > { %3906 = vmatpush3.bf16.msra.mxu0 %v4284_v56  ;;  %v4310_v56 = vld [vmem:[#allocation5 + $0x230] sm:$0xff]  }
 0x418   : > { %3884 = vmatpush3.bf16.msra.mxu1 %v4285_v54  ;;  %3907 = vmatprep.subr.bf16.mxu0 %v4286_v50  ;;  %v5748_v54 = vmov 0.0  }
 0x419   : > { %3885 = vmatprep.subr.bf16.mxu1 %v4287_v52  ;;  %v3384_v10 = vpack.c.bf16 %v5748_v54, %v5184_v44 }
 0x41b   : > { %3908 = vmatpush3.bf16.msra.mxu0 %v4286_v50 }
 0x41c   : > { %3886 = vmatpush3.bf16.msra.mxu1 %v4287_v52  ;;  %3909 = vmatprep.subr.bf16.mxu0 %v4288_v37 }
 0x41d   : > { %3887 = vmatprep.subr.bf16.mxu1 %v4289_v9 }
 0x41f   : > { %3910 = vmatpush3.bf16.msra.mxu0 %v4288_v37 }
 0x420   : > { %3888 = vmatpush3.bf16.msra.mxu1 %v4289_v9  ;;  %3911 = vmatprep.subr.bf16.mxu0 %v4290_v38 }
 0x421   : > { %3889 = vmatprep.subr.bf16.mxu1 %v4291_v57 }
 0x423   : > { %3912 = vmatpush3.bf16.msra.mxu0 %v4290_v38 }
 0x424   : > { %3890 = vmatpush3.bf16.msra.mxu1 %v4291_v57  ;;  %3913 = vmatprep.subr.bf16.mxu0 %v4292_v59 }
 0x425   : > { %3923 = vmatprep.subr.bf16.mxu1 %v4293_v1 }
 0x427   : > { %3892 = vmatmul.mubr.bf16.vlgmr.msra.gmra.mxu1 %v1648_v49  ;;  %3914 = vmatpush3.bf16.msra.mxu0 %v4292_v59  ;;  %v4300_v49 = vld [vmem:[#allocation5 + $0x1e0] sm:$0xff]  }
 0x428   : > { %3895 = vmatprep.mubr.bf16.mxu1 %v1649_v13  ;;  %3924 = vmatpush3.bf16.msra.mxu1 %v4293_v1 }
 0x429   : > { %3947 = vmatprep.subr.bf16.mxu0 %v4294_v7  ;;  %3925 = vmatprep.subr.bf16.mxu1 %v4295_v15 }
 0x42a   : > { %3916 = vmatmul.mubr.msk.bf16.vlgmr.msra.gmra.mxu0 %vm5138_vm11, %v3358_v40 }
 0x42b   : > { %3919 = vmatprep.mubr.msk.bf16.mxu0 %vm5138_vm11, %v3361_v41  ;;  %3948 = vmatpush3.bf16.msra.mxu0 %v4294_v7 }
 0x42c   : > { %3926 = vmatpush3.bf16.msra.mxu1 %v4295_v15  ;;  %3949 = vmatprep.subr.bf16.mxu0 %v4296_v47 }
 0x42d   : > { %3927 = vmatprep.subr.bf16.mxu1 %v4297_v20 }
 0x42f   : > { %3896 = vmatmul.mubr.bf16.gmra.mxu1 %v5747_v43  ;;  %3950 = vmatpush3.bf16.msra.mxu0 %v4296_v47 }
 0x430   : > { %3928 = vmatpush3.bf16.msra.mxu1 %v4297_v20  ;;  %3939 = vmatprep.mubr.msk.bf16.mxu1 %vm5039_vm7, %v5044_v11  ;;  %v4304_v11 = vld [vmem:[#allocation5 + $0x1d0] sm:$0xff]  }
 0x431   : > { %3951 = vmatprep.subr.bf16.mxu0 %v4298_v53  ;;  %3929 = vmatprep.subr.bf16.mxu1 %v4299_v42 }
 0x432   : > { %3920 = vmatmul.mubr.msk.bf16.gmra.mxu0 %vm5138_vm11, %v3364_v58 }
 0x433   : > { %3952 = vmatpush3.bf16.msra.mxu0 %v4298_v53  ;;  %3963 = vmatprep.mubr.bf16.mxu0 %v5002_v55  ;;  %v4308_v55 = vld [vmem:[#allocation5 + $0x1c0] sm:$0xff]  }
 0x434   : > { %3930 = vmatpush3.bf16.msra.mxu1 %v4299_v42  ;;  %3953 = vmatprep.subr.bf16.mxu0 %v4300_v49 }
 0x435   : > { %3931 = vmatprep.subr.bf16.mxu1 %v4301_v60 }
 0x437   : > { %3954 = vmatpush3.bf16.msra.mxu0 %v4300_v49 }
 0x438   : > { %3932 = vmatpush3.bf16.msra.mxu1 %v4301_v60  ;;  %3955 = vmatprep.subr.bf16.mxu0 %v4302_v61 }
 0x439   : > { %3933 = vmatprep.subr.bf16.mxu1 %v4303_v0 }
 0x43b   : > { %3956 = vmatpush3.bf16.msra.mxu0 %v4302_v61 }
 0x43c   : > { %3934 = vmatpush3.bf16.msra.mxu1 %v4303_v0  ;;  %3957 = vmatprep.subr.bf16.mxu0 %v4304_v11 }
 0x43d   : > { %3935 = vmatprep.subr.bf16.mxu1 %v4305_v2 }
 0x43f   : > { %3958 = vmatpush3.bf16.msra.mxu0 %v4304_v11 }
 0x440   : > { %3936 = vmatpush3.bf16.msra.mxu1 %v4305_v2  ;;  %3959 = vmatprep.subr.bf16.mxu0 %v4306_v3 }
 0x441   : > { %3937 = vmatprep.subr.bf16.mxu1 %v4307_v8 }
 0x443   : > { %3960 = vmatpush3.bf16.msra.mxu0 %v4306_v3 }
 0x444   : > { %3938 = vmatpush3.bf16.msra.mxu1 %v4307_v8  ;;  %3961 = vmatprep.subr.bf16.mxu0 %v4308_v55 }
 0x445   : > { %3971 = vmatprep.subr.bf16.mxu1 %v4309_v46 }
 0x447   : > { %3940 = vmatmul.mubr.msk.bf16.vlgmr.msra.gmra.mxu1 %vm5039_vm7, %v5057_v14  ;;  %3962 = vmatpush3.bf16.msra.mxu0 %v4308_v55  ;;  %v4312_v14 = vld [vmem:[#allocation5 + $0x220] sm:$0xff]  }
 0x448   : > { %3943 = vmatprep.mubr.msk.bf16.mxu1 %vm5039_vm7, %v5100_v51  ;;  %3972 = vmatpush3.bf16.msra.mxu1 %v4309_v46 }
 0x449   : > { %3973 = vmatprep.subr.bf16.mxu1 %v4310_v56  ;;  %3995 = vmatprep.subr.mxu0 %v5748_v54 }
 0x44a   : > { %3964 = vmatmul.mubr.bf16.vlgmr.msra.gmra.mxu0 %v5014_v62 }
 0x44b   : > { %3967 = vmatprep.mubr.bf16.mxu0 %v5077_v39  ;;  %3996 = vmatpush3.msra.mxu0 %v4747_v21  ;;  %v2140_v21 = vpack.c.bf16 %v5748_v54, %v4993_v45 }
 0x44c   : > { %3974 = vmatpush3.bf16.msra.mxu1 %v4310_v56  ;;  %3997 = vmatprep.subr.mxu0 %v5748_v54 }
 0x44d   : > { %3975 = vmatprep.subr.bf16.mxu1 %v4311_v16  ;;  %3998 = vmatpush3.msra.mxu0 %v4755_v22  ;;  %v4314_v22 = vld [vmem:[#allocation5 + $0x210] sm:$0xff]  }
 0x44e   : > { %3999 = vmatprep.subr.mxu0 %v5748_v54 }
 0x44f   : > { %3944 = vmatmul.mubr.msk.bf16.gmra.mxu1 %vm3383_vm12, %v3384_v10  ;;  %4000 = vmatpush3.msra.mxu0 %v4762_v23  ;;  %v4315_v23 = vld [vmem:[#allocation5 + $0x208] sm:$0xff]  }
 0x450   : > { %3976 = vmatpush3.bf16.msra.mxu1 %v4311_v16  ;;  %3987 = vmatprep.mubr.msk.bf16.mxu1 %vm5138_vm11, %v5143_v6 }
 0x451   : > { %3977 = vmatprep.subr.bf16.mxu1 %v4312_v14  ;;  %4001 = vmatprep.subr.mxu0 %v5748_v54 }
 0x452   : > { %3968 = vmatmul.mubr.bf16.gmra.mxu0 %v2140_v21 }
 0x453   : > { %4002 = vmatpush3.msra.mxu0 %v4769_v24  ;;  %4027 = vmatprep.mubr.msk.f32.mxu0 %vm4504_vm0, %v5748_v54  ;;  %v4316_v24 = vld [vmem:[#allocation5 + $0x200] sm:$0xff]  }
 0x454   : > { %3978 = vmatpush3.bf16.msra.mxu1 %v4312_v14  ;;  %4003 = vmatprep.subr.mxu0 %v5748_v54 }
 0x455   : > { %3979 = vmatprep.subr.bf16.mxu1 %v4313_v18  ;;  %4004 = vmatpush3.msra.mxu0 %v4776_v25  ;;  %v3412_v25 = vpack.c.bf16 %v5748_v54, %v5108_v63 }
 0x456   : > { %4005 = vmatprep.subr.mxu0 %v5748_v54 }
 0x457   : > { %4006 = vmatpush3.msra.mxu0 %v4783_v26 }
 0x458   : > { %3980 = vmatpush3.bf16.msra.mxu1 %v4313_v18  ;;  %4007 = vmatprep.subr.mxu0 %v5748_v54 }
 0x459   : > { %3981 = vmatprep.subr.bf16.mxu1 %v4314_v22  ;;  %4008 = vmatpush3.msra.mxu0 %v4790_v27 }
 0x45a   : > { %4009 = vmatprep.subr.mxu0 %v5748_v54 }
 0x45b   : > { %4010 = vmatpush3.msra.mxu0 %v4797_v28 }
 0x45c   : > { %3982 = vmatpush3.bf16.msra.mxu1 %v4314_v22  ;;  %4011 = vmatprep.subr.mxu0 %v5748_v54 }
 0x45d   : > { %3983 = vmatprep.subr.bf16.mxu1 %v4315_v23  ;;  %4012 = vmatpush3.msra.mxu0 %v4804_v29 }
 0x45e   : > { %4013 = vmatprep.subr.mxu0 %v5748_v54 }
 0x45f   : > { %4014 = vmatpush3.msra.mxu0 %v4811_v30 }
 0x460   : > { %3984 = vmatpush3.bf16.msra.mxu1 %v4315_v23  ;;  %4015 = vmatprep.subr.mxu0 %v5748_v54 }
 0x461   : > { %3985 = vmatprep.subr.bf16.mxu1 %v4316_v24  ;;  %4016 = vmatpush3.msra.mxu0 %v4816_v31 }
 0x462   : > { %4017 = vmatprep.subr.mxu0 %v5748_v54 }
 0x463   : > { %4018 = vmatpush3.msra.mxu0 %v4825_v32 }
 0x464   : > { %3986 = vmatpush3.bf16.msra.mxu1 %v4316_v24  ;;  %4019 = vmatprep.subr.mxu0 %v5748_v54 }
 0x465   : > { %4020 = vmatpush3.msra.mxu0 %v4834_v33  ;;  %4030 = vmatprep.subr.mxu1 %v5748_v54 }
 0x466   : > { %4021 = vmatprep.subr.mxu0 %v5748_v54 }
 0x467   : > { %3988 = vmatmul.mubr.msk.bf16.vlgmr.msra.gmra.mxu1 %vm5138_vm11, %v5147_v19  ;;  %4022 = vmatpush3.msra.mxu0 %v4841_v34 }
 0x468   : > { %3991 = vmatprep.mubr.msk.bf16.mxu1 %vm5138_vm11, %v5176_v12  ;;  %4023 = vmatprep.subr.mxu0 %v5748_v54 }
 0x469   : > { %4024 = vmatpush3.msra.mxu0 %v4848_v35  ;;  %4031 = vmatpush3.msk.msra.mxu1 %vm746_vm1, %v4891_v4 }
 0x46a   : > { %4025 = vmatprep.subr.mxu0 %v5748_v54  ;;  %4035 = vmatprep.subr.mxu1 %v5748_v54 }
 0x46b   : > { %4026 = vmatpush3.msra.mxu0 %v4855_v36 }
 0x46f   : > { %3992 = vmatmul.mubr.msk.bf16.gmra.mxu1 %vm3411_vm13, %v3412_v25 }
 0x470   : > { %4032 = vmatprep.mubr.msk.f32.mxu1 %vm4504_vm0, %v5748_v54 }
 0x4a6   : > { %v3797_v26 = vpop.f32.mrf.mxu1 }
 0x4a8   : > { %v1134_v27 = vpop.f32.mrf.mxu1 }
 0x4aa   : > { %v3798_v28 = vpop.f32.mrf.mxu1  ;;  %v3821_v29 = vpop.f32.mrf.mxu0 }
 0x4ab   : > { %v1256_v21 = vadd.f32 %v3821_v29, %v3797_v26 }
 0x4ac   : > { %v1137_v30 = vpop.f32.mrf.mxu1  ;;  %v1247_v31 = vpop.f32.mrf.mxu0 }
 0x4ad   : > { %v1248_v16 = vadd.f32 %v1247_v31, %v1134_v27 }
 0x4ae   : > { %v5291_v32 = vpop.f32.mrf.mxu1  ;;  %v3822_v33 = vpop.f32.mrf.mxu0 }
 0x4af   : > { %v1259_v23 = vadd.f32 %v3822_v33, %v3798_v28 }
 0x4b0   : > { %v1150_v34 = vpop.f32.mrf.mxu1  ;;  %v1250_v35 = vpop.f32.mrf.mxu0 }
 0x4b1   : > { %v1251_v18 = vadd.f32 %v1250_v35, %v1137_v30 }
 0x4b2   : > { %v5293_v36 = vpop.f32.mrf.mxu1  ;;  %v3825_v4 = vpop.f32.mrf.mxu0 }
 0x4b3   : > { %5749 = vst [vmem:[#allocation15_spill] sm:$0xff] %v5293_v36  ;;  %v1272_v27 = vadd.f32 %v3825_v4, %v5291_v32 }
 0x4b4   : > { %v1153_v45 = vpop.f32.mrf.mxu1  ;;  %v1263_v62 = vpop.f32.mrf.mxu0 }
 0x4b5   : > { %v1264_v17 = vadd.f32 %v1263_v62, %v1150_v34 }
 0x4b6   : > { %v3826_v51 = vpop.f32.mrf.mxu0 }
 0x4b8   : > { %v1266_v5 = vpop.f32.mrf.mxu0 }
 0x4b9   : > { %v1267_v26 = vadd.f32 %v1266_v5, %v1153_v45 }
 0x4ba   : > { %v5757_v28 = vld [vmem:[#allocation15_spill] sm:$0xff] }
 0x4bb   : > { %v1275_v33 = vadd.f32 %v3826_v51, %v5757_v28 }
 0x4c7   : > { %v3845_v48 = vpop.f32.mrf.mxu1 }
 0x4c8   : > { %v1451_v24 = vadd.f32 %v3845_v48, %v1256_v21 }
 0x4c9   : > { %v1418_v39 = vpop.f32.mrf.mxu1 }
 0x4ca   : > { %v3869_v6 = vpop.f32.mrf.mxu0  ;;  %v1449_v22 = vadd.f32 %v1418_v39, %v1248_v16 }
 0x4cb   : > { %v3846_v63 = vpop.f32.mrf.mxu1 }
 0x4cc   : > { %v1591_v12 = vpop.f32.mrf.mxu0 }
 0x4cd   : > { %v1421_v19 = vpop.f32.mrf.mxu1 }
 0x4ce   : > { %v3870_v50 = vpop.f32.mrf.mxu0  ;;  %v1450_v25 = vadd.f32 %v1421_v19, %v1251_v18 }
 0x4cf   : > { %v3849_v44 = vpop.f32.mrf.mxu1 }
 0x4d0   : > { %v1594_v37 = vpop.f32.mrf.mxu0  ;;  %v1455_v48 = vadd.f32 %v3849_v44, %v1272_v27 }
 0x4d1   : > { %v1434_v52 = vpop.f32.mrf.mxu1 }
 0x4d2   : > { %v5295_v38 = vpop.f32.mrf.mxu0 }
 0x4d3   : > { %v3850_v9 = vpop.f32.mrf.mxu1  ;;  %5750 = vst [vmem:[#allocation16_spill] sm:$0xff] %v5295_v38  ;;  %v1624_v38 = vadd.f32 %v3869_v6, %v1451_v24 }
 0x4d4   : > { %v1607_v1 = vpop.f32.mrf.mxu0  ;;  %v1456_v19 = vadd.f32 %v3850_v9, %v1275_v33 }
 0x4d5   : > { %v1437_v57 = vpop.f32.mrf.mxu1 }
 0x4d6   : > { %v5297_v15 = vpop.f32.mrf.mxu0  ;;  %v1454_v62 = vadd.f32 %v1437_v57, %v1267_v26 }
 0x4d7   : > { %5751 = vst [vmem:[#allocation17_spill] sm:$0xff] %v5297_v15  ;;  %v1453_v15 = vadd.f32 %v1434_v52, %v1264_v17 }
 0x4d8   : > { %v1610_v40 = vpop.f32.mrf.mxu0 }
 0x4d9   : > { %v1626_v34 = vadd.f32 %v1607_v1, %v1453_v15  ;;  %v1627_v5 = vadd.f32 %v1610_v40, %v1454_v62 }
 0x4da   : > { %v5758_v4 = vld [vmem:[#allocation16_spill] sm:$0xff] }
 0x4de   : > { %v5759_v51 = vld [vmem:[#allocation17_spill] sm:$0xff] }
 0x4df   : > { %v1629_v44 = vadd.f32 %v5759_v51, %v1456_v19 }
 0x4e7   : > { %v3893_v59 = vpop.f32.mrf.mxu1 }
 0x4e8   : > { %v1766_v30 = vadd.f32 %v3893_v59, %v1624_v38 }
 0x4e9   : > { %v1733_v7 = vpop.f32.mrf.mxu1 }
 0x4ea   : > { %v3917_v47 = vpop.f32.mrf.mxu0 }
 0x4eb   : > { %v3894_v13 = vpop.f32.mrf.mxu1  ;;  %v1924_v52 = vadd.f32 %v3917_v47, %v1766_v30 }
 0x4ec   : > { %v1891_v20 = vpop.f32.mrf.mxu0 }
 0x4ed   : > { %v1736_v41 = vpop.f32.mrf.mxu1 }
 0x4ee   : > { %v3918_v42 = vpop.f32.mrf.mxu0 }
 0x4ef   : > { %v3897_v53 = vpop.f32.mrf.mxu1 }
 0x4f0   : > { %v1894_v58 = vpop.f32.mrf.mxu0 }
 0x4f1   : > { %v1749_v43 = vpop.f32.mrf.mxu1 }
 0x4f2   : > { %v5301_v60 = vpop.f32.mrf.mxu0  ;;  %v1768_v17 = vadd.f32 %v1749_v43, %v1626_v34 }
 0x4f3   : > { %v5299_v49 = vpop.f32.mrf.mxu1  ;;  %5753 = vst [vmem:[#allocation19_spill] sm:$0xff] %v5301_v60 }
 0x4f4   : > { %5752 = vst [vmem:[#allocation18_spill] sm:$0xff] %v5299_v49  ;;  %v1907_v11 = vpop.f32.mrf.mxu0  ;;  %v1452_v49 = vadd.f32 %v3846_v63, %v1259_v23 }
 0x4f5   : > { %v1752_v61 = vpop.f32.mrf.mxu1  ;;  %v1926_v57 = vadd.f32 %v1907_v11, %v1768_v17 }
 0x4f6   : > { %v5303_v3 = vpop.f32.mrf.mxu0  ;;  %v1625_v29 = vadd.f32 %v3870_v50, %v1452_v49  ;;  %v1769_v9 = vadd.f32 %v1752_v61, %v1627_v5 }
 0x4f7   : > { %5754 = vst [vmem:[#allocation20_spill] sm:$0xff] %v5303_v3  ;;  %v1622_v3 = vadd.f32 %v1591_v12, %v1449_v22 }
 0x4f8   : > { %v5305_v55 = vpop.f32.mrf.mxu0  ;;  %v1767_v39 = vadd.f32 %v3894_v13, %v1625_v29 }
 0x4f9   : > { %5755 = vst [vmem:[#allocation21_spill] sm:$0xff] %v5305_v55  ;;  %v1623_v55 = vadd.f32 %v1594_v37, %v1450_v25  ;;  %v1764_v36 = vadd.f32 %v1733_v7, %v1622_v3  ;;  %v1628_v7 = vadd.f32 %v5758_v4, %v1455_v48 }
 0x4fa   : > { %v1925_v50 = vadd.f32 %v3918_v42, %v1767_v39  ;;  %v5761_v40 = vld [vmem:[#allocation19_spill] sm:$0xff] }
 0x4fb   : > { %v1765_v35 = vadd.f32 %v1736_v41, %v1623_v55  ;;  %v1922_v63 = vadd.f32 %v1891_v20, %v1764_v36  ;;  %v1770_v1 = vadd.f32 %v3897_v53, %v1628_v7  ;;  %v5760_v20 = vld [vmem:[#allocation18_spill] sm:$0xff] }
 0x4fc   : > { %v1771_v47 = vadd.f32 %v5760_v20, %v1629_v44  ;;  %v4350_v20 = vld [vmem:[%s5698_s5 + $0x70] sm:$0xff] }
 0x4fd   : > { %v1923_v37 = vadd.f32 %v1894_v58, %v1765_v35  ;;  %v1928_v42 = vadd.f32 %v5761_v40, %v1770_v1  ;;  %v4357_v40 = vld [vmem:[%s5698_s5 + $0x38] sm:$0xff] }
 0x4fe   : > { %v5763_v18 = vld [vmem:[#allocation20_spill] sm:$0xff] }
 0x4ff   : > { %v1929_v61 = vadd.f32 %v5763_v18, %v1771_v47  ;;  %v4351_v47 = vld [vmem:[%s5698_s5 + $0x68] sm:$0xff] }
 0x507   : > { %v3941_v0 = vpop.f32.mrf.mxu1 }
 0x508   : > { %v2098_v38 = vadd.f32 %v3941_v0, %v1924_v52 }
 0x509   : > { %v2065_v2 = vpop.f32.mrf.mxu1 }
 0x50a   : > { %v3965_v46 = vpop.f32.mrf.mxu0  ;;  %v2096_v32 = vadd.f32 %v2065_v2, %v1922_v63 }
 0x50b   : > { %v3942_v8 = vpop.f32.mrf.mxu1  ;;  %v2256_v49 = vadd.f32 %v3965_v46, %v2098_v38 }
 0x50c   : > { %v2223_v10 = vpop.f32.mrf.mxu0  ;;  %v2099_v13 = vadd.f32 %v3942_v8, %v1925_v50 }
 0x50d   : > { %v2068_v56 = vpop.f32.mrf.mxu1  ;;  %v2254_v41 = vadd.f32 %v2223_v10, %v2096_v32 }
 0x50e   : > { %v3966_v54 = vpop.f32.mrf.mxu0  ;;  %v2097_v59 = vadd.f32 %v2068_v56, %v1923_v37  ;;  %v5762_v56 = vld [vmem:[#allocation21_spill] sm:$0xff] }
 0x50f   : > { %v5307_v14 = vpop.f32.mrf.mxu1  ;;  %v1927_v16 = vadd.f32 %v5762_v56, %v1769_v9  ;;  %v2257_v53 = vadd.f32 %v3966_v54, %v2099_v13  ;;  %v4349_v13 = vld [vmem:[%s5698_s5 + $0x78] sm:$0xff] }
 0x510   : > { %5756 = vst [vmem:[#allocation22_spill] sm:$0xff] %v5307_v14  ;;  %v2226_v31 = vpop.f32.mrf.mxu0  ;;  %v4361_v56 = vld [vmem:[%s5698_s5 + $0x18] sm:$0xff] }
 0x511   : > { %v2081_v60 = vpop.f32.mrf.mxu1  ;;  %v2255_v2 = vadd.f32 %v2226_v31, %v2097_v59 }
 0x512   : > { %v3969_v6 = vpop.f32.mrf.mxu0  ;;  %v2100_v43 = vadd.f32 %v2081_v60, %v1926_v57  ;;  %v3414_v60 = vld [vmem:[%s5700_s7] ss:$0 sm:$0xff] }
 0x513   : > { %v3946_v14 = vpop.f32.mrf.mxu1 }
 0x514   : > { %v2239_v15 = vpop.f32.mrf.mxu0  ;;  %v2103_v31 = vadd.f32 %v3946_v14, %v1929_v61 }
 0x515   : > { %v2084_v12 = vpop.f32.mrf.mxu1  ;;  %v2258_v22 = vadd.f32 %v2239_v15, %v2100_v43  ;;  %v4352_v43 = vld [vmem:[%s5698_s5 + $0x60] sm:$0xff] }
 0x516   : > { %v3970_v0 = vpop.f32.mrf.mxu0  ;;  %v2101_v23 = vadd.f32 %v2084_v12, %v1927_v16  ;;  %v4362_v16 = vld [vmem:[%s5698_s5 + $0x10] sm:$0xff] }
 0x517   : > { %v5764_v8 = vld [vmem:[#allocation22_spill] sm:$0xff]  ;;  %v2261_v39 = vadd.f32 %v3970_v0, %v2103_v31  ;;  %v4359_v0 = vld [vmem:[%s5698_s5 + $0x28] sm:$0xff]  ;;  %v4321_v31 = vld [vmem:[%s5701_s8 + $0x18] sm:$0xff]  }
 0x518   : > { %v2102_v10 = vadd.f32 %v5764_v8, %v1928_v42  ;;  %v2242_v54 = vpop.f32.mrf.mxu0  ;;  %v4358_v42 = vld [vmem:[%s5698_s5 + $0x30] sm:$0xff] }
 0x519   : > { %v2259_v48 = vadd.f32 %v2242_v54, %v2101_v23  ;;  %v4319_v23 = vld [vmem:[%s5701_s8 + $0x28] sm:$0xff]   ;;  %v4322_v54 = vld [vmem:[%s5701_s8 + $0x10] sm:$0xff]  }
 0x51a   : > { %v2260_v33 = vadd.f32 %v3969_v6, %v2102_v10 }
 0x527   : > { %v3989_v45 = vpop.f32.mrf.mxu1 }
 0x528   : > { %v2414_v11 = vadd.f32 %v3989_v45, %v2256_v49  ;;  %v4354_v49 = vld [vmem:[%s5698_s5 + $0x50] sm:$0xff] }
 0x529   : > { %v2381_v36 = vpop.f32.mrf.mxu1 }
 0x52a   : > { %v2412_v3 = vadd.f32 %v2381_v36, %v2254_v41  ;;  %v5325_v29 = vadd.f32 %v3414_v60, %v2414_v11  ;;  %v5765_v41 = vmov 0.0   ;;  %v4364_v11 = vld [vmem:[%s5698_s5] sm:$0xff] }
 0x52b   : > { %v3990_v58 = vpop.f32.mrf.mxu1 }
 0x52c   : > { %v5321_v24 = vadd.f32 %v3414_v60, %v2412_v3  ;;  %v2415_v25 = vadd.f32 %v3990_v58, %v2257_v53  ;;  %v4353_v58 = vld [vmem:[%s5698_s5 + $0x58] sm:$0xff]  ;;  %v4356_v3 = vld [vmem:[%s5698_s5 + $0x40] sm:$0xff]  ;;  %v4363_v53 = vld [vmem:[%s5698_s5 + $0x8] sm:$0xff] }
 0x52d   : > { %v2384_v55 = vpop.f32.mrf.mxu1 }
 0x52e   : > { %v2413_v21 = vadd.f32 %v2384_v55, %v2255_v2  ;;  %v5329_v34 = vadd.f32 %v3414_v60, %v2415_v25  ;;  %v4355_v2 = vld [vmem:[%s5698_s5 + $0x48] sm:$0xff]  ;;  %v4360_v55 = vld [vmem:[%s5698_s5 + $0x20] sm:$0xff] }
 0x52f   : > { %v3993_v46 = vpop.f32.mrf.mxu1  ;;  %v4320_v25 = vld [vmem:[%s5701_s8 + $0x20] sm:$0xff]  }
 0x530   : > { %v5323_v27 = vadd.f32 %v3414_v60, %v2413_v21  ;;  %v2418_v19 = vadd.f32 %v3993_v46, %v2260_v33  ;;  %v4318_v46 = vld [vmem:[%s5701_s8 + $0x30] sm:$0xff]  }
 0x531   : > { %v2397_v26 = vpop.f32.mrf.mxu1 }
 0x532   : > { %v2435_v30 = vadd.f32 %v5323_v27, %v5321_v24  ;;  %v2416_v35 = vadd.f32 %v2397_v26, %v2258_v22  ;;  %v5338_v4 = vadd.f32 %v3414_v60, %v2418_v19  ;;  %v4323_v26 = vld [vmem:[%s5701_s8 + $0x8] sm:$0xff]  }
 0x533   : > { %v3994_v28 = vpop.f32.mrf.mxu1 }
 0x534   : > { %v2436_v62 = vadd.f32 %v2435_v30, %v5325_v29  ;;  %v5332_v17 = vadd.f32 %v3414_v60, %v2416_v35  ;;  %v2419_v37 = vadd.f32 %v3994_v28, %v2261_v39  ;;  %v4324_v30 = vld [vmem:[%s5701_s8] sm:$0xff]  }
 0x535   : > { %v2400_v63 = vpop.f32.mrf.mxu1 }
 0x536   : > { %v2437_v14 = vadd.f32 %v2436_v62, %v5329_v34  ;;  %v2417_v12 = vadd.f32 %v2400_v63, %v2259_v48  ;;  %v5341_v7 = vadd.f32 %v3414_v60, %v2419_v37  ;;  %v5766_v63 = vld [vmem:[#allocation14_spill] sm:$0xff] }
 0x538   : > { %v2438_v52 = vadd.f32 %v2437_v14, %v5332_v17  ;;  %v5336_v32 = vadd.f32 %v3414_v60, %v2417_v12  ;;  %v4317_v60 = vld [vmem:[%s5701_s8 + $0x38] sm:$0xff]  }
 0x539   : > { %4070 = vmatprep.subr.bf16.mxu0 %v4317_v60 }
 0x53a   : > { %v2439_v6 = vadd.f32 %v2438_v52, %v5336_v32 }
 0x53c   : > { %v2440_v45 = vadd.f32 %v2439_v6, %v5338_v4 }
 0x53e   : > { %v2441_v5 = vadd.f32 %v2440_v45, %v5341_v7 }
 0x540   : > { %v2442_v50 = vrot.slane %v2441_v5, 4 }
 0x542   : > { %v2443_v38 = vadd.f32 %v2442_v50, %v2441_v5 }
 0x544   : > { %v2444_v59 = vrot.slane %v2443_v38, 2 }
 0x546   : > { %v2445_v51 = vadd.f32 %v2444_v59, %v2443_v38 }
 0x548   : > { %v2446_v44 = vrot.slane %v2445_v51, 1 }
 0x54a   : > { %v2447_v1 = vadd.f32 %v2446_v44, %v2445_v51 }
 0x54c   : > { %v2448_v57 = vmul.f32 0.015625, %v2447_v1 }
 0x54e   : > { %4028 = vmatmul.mubr.f32.vlgmr.msra.gmra.mxu0 %v2448_v57 }
 0x54f   : > { %4071 = vmatpush3.bf16.msra.mxu0 %v4317_v60 }
 0x550   : > { %4072 = vmatprep.subr.bf16.mxu0 %v4318_v46 }
 0x553   : > { %4073 = vmatpush3.bf16.msra.mxu0 %v4318_v46 }
 0x554   : > { %4074 = vmatprep.subr.bf16.mxu0 %v4319_v23 }
 0x557   : > { %4075 = vmatpush3.bf16.msra.mxu0 %v4319_v23 }
 0x558   : > { %4076 = vmatprep.subr.bf16.mxu0 %v4320_v25 }
 0x55b   : > { %4077 = vmatpush3.bf16.msra.mxu0 %v4320_v25 }
 0x55c   : > { %4078 = vmatprep.subr.bf16.mxu0 %v4321_v31 }
 0x55f   : > { %4079 = vmatpush3.bf16.msra.mxu0 %v4321_v31 }
 0x560   : > { %4080 = vmatprep.subr.bf16.mxu0 %v4322_v54 }
 0x563   : > { %4081 = vmatpush3.bf16.msra.mxu0 %v4322_v54 }
 0x564   : > { %4082 = vmatprep.subr.bf16.mxu0 %v4323_v26 }
 0x567   : > { %4083 = vmatpush3.bf16.msra.mxu0 %v4323_v26 }
 0x568   : > { %4084 = vmatprep.subr.bf16.mxu0 %v4324_v30 }
 0x56b   : > { %4085 = vmatpush3.bf16.msra.mxu0 %v4324_v30 }
 0x56c   : > { %4136 = vmatprep.subr.mxu0 %v5765_v41 }
 0x60e   : > { %v2515_v15 = vpop.f32.mrf.mxu0 }
 0x60f   : > { %v2519_v36 = vmax.f32 %v2515_v15, 0.0 }
 0x610   : > { %v4029_v9 = vpop.f32.mrf.mxu0 }
 0x611   : > { %4033 = vmatmul.mubr.msk.f32.vlgmr.msra.gmra.mxu1 %vm742_vm2, %v2519_v36  ;;  %v2847_v36 = vld [vmem:[%s5703_s10 + $0x60] sm:$0xff]  ;;  %v2846_v9 = vld [vmem:[%s5703_s10 + $0x58] sm:$0xff] }
 0x612   : > { %4036 = vmatpush3.msra.mxu1 %v4349_v13  ;;  %4067 = vmatprep.mubr.msk.f32.mxu1 %vm4504_vm0, %v5765_v41  ;;  %v2845_v13 = vld [vmem:[%s5703_s10 + $0x50] sm:$0xff] }
 0x613   : > { %4037 = vmatprep.subr.mxu1 %v5765_v41 }
 0x614   : > { %4038 = vmatpush3.msra.mxu1 %v4350_v20  ;;  %v2844_v20 = vld [vmem:[%s5703_s10 + $0x48] sm:$0xff] }
 0x615   : > { %4039 = vmatprep.subr.mxu1 %v5765_v41 }
 0x616   : > { %4040 = vmatpush3.msra.mxu1 %v4351_v47  ;;  %v2843_v47 = vld [vmem:[%s5703_s10 + $0x40] sm:$0xff] }
 0x617   : > { %4041 = vmatprep.subr.mxu1 %v5765_v41 }
 0x618   : > { %4042 = vmatpush3.msra.mxu1 %v4352_v43  ;;  %v2842_v43 = vld [vmem:[%s5703_s10 + $0x38] sm:$0xff] }
 0x619   : > { %4043 = vmatprep.subr.mxu1 %v5765_v41 }
 0x61a   : > { %4044 = vmatpush3.msra.mxu1 %v4353_v58  ;;  %v2841_v58 = vld [vmem:[%s5703_s10 + $0x30] sm:$0xff] }
 0x61b   : > { %4045 = vmatprep.subr.mxu1 %v5765_v41 }
 0x61c   : > { %4046 = vmatpush3.msra.mxu1 %v4354_v49  ;;  %v2840_v49 = vld [vmem:[%s5703_s10 + $0x28] sm:$0xff] }
 0x61d   : > { %4047 = vmatprep.subr.mxu1 %v5765_v41 }
 0x61e   : > { %4048 = vmatpush3.msra.mxu1 %v4355_v2  ;;  %v2839_v2 = vld [vmem:[%s5703_s10 + $0x20] sm:$0xff] }
 0x61f   : > { %4049 = vmatprep.subr.mxu1 %v5765_v41 }
 0x620   : > { %4050 = vmatpush3.msra.mxu1 %v4356_v3  ;;  %v2838_v3 = vld [vmem:[%s5703_s10 + $0x18] sm:$0xff] }
 0x621   : > { %4051 = vmatprep.subr.mxu1 %v5765_v41 }
 0x622   : > { %4052 = vmatpush3.msra.mxu1 %v4357_v40  ;;  %v2837_v40 = vld [vmem:[%s5703_s10 + $0x10] sm:$0xff] }
 0x623   : > { %4053 = vmatprep.subr.mxu1 %v5765_v41 }
 0x624   : > { %4054 = vmatpush3.msra.mxu1 %v4358_v42  ;;  %v2836_v42 = vld [vmem:[%s5703_s10 + $0x8] sm:$0xff] }
 0x625   : > { %4055 = vmatprep.subr.mxu1 %v5765_v41 }
 0x626   : > { %4056 = vmatpush3.msra.mxu1 %v4359_v0  ;;  %v2835_v0 = vld [vmem:[%s5703_s10] sm:$0xff] }
 0x627   : > { %4057 = vmatprep.subr.mxu1 %v5765_v41 }
 0x628   : > { %4058 = vmatpush3.msra.mxu1 %v4360_v55 }
 0x629   : > { %4059 = vmatprep.subr.mxu1 %v5765_v41 }
 0x62a   : > { %4060 = vmatpush3.msra.mxu1 %v4361_v56 }
 0x62b   : > { %4061 = vmatprep.subr.mxu1 %v5765_v41 }
 0x62c   : > { %4062 = vmatpush3.msra.mxu1 %v4362_v16 }
 0x62d   : > { %4063 = vmatprep.subr.mxu1 %v5765_v41 }
 0x62e   : > { %4064 = vmatpush3.msra.mxu1 %v4363_v53  ;;  %v3419_v53 = vld [vmem:[%s5702_s9] ss:$0 sm:$0xff] }
 0x62f   : > { %4065 = vmatprep.subr.mxu1 %v5765_v41 }
 0x630   : > { %4066 = vmatpush3.msra.mxu1 %v4364_v11 }
 0x631   : > { %4094 = vmatprep.subr.mxu1 %v5765_v41 }
 0x6d1   : > { %v2589_v21 = vpop.f32.mrf.mxu1 }
 0x6d2   : > { %v3417_v18 = vmul.f32 -1.442695, %v2589_v21 }
 0x6d3   : > { %v4034_v61 = vpop.f32.mrf.mxu1 }
 0x6d4   : > { %4333 = vpow2.f32 %v3417_v18 }
 0x6e1   : > { %v4334_v8 = vpop.eup %4333 }
 0x6e2   : > { %v2596_v10 = vadd.f32 1.0, %v4334_v8 }
 0x6e4   : > { %4335 = vrcp.f32 %v2596_v10 }
 0x6f1   : > { %v4336_v22 = vpop.eup %4335 }
 0x6f2   : > { %4068 = vmatmul.mubr.f32.vlgmr.msra.gmra.mxu1 %v4336_v22 }
 0x6f3   : > { %4126 = vmatprep.mubr.msk.f32.mxu1 %vm4504_vm0, %v5765_v41 }
 0x7b2   : > { %v2665_v35 = vpop.f32.mrf.mxu1 }
 0x7b3   : > { %v3418_v28 = vmul.f32 -1.442695, %v2665_v35 }
 0x7b4   : > { %v4069_v33 = vpop.f32.mrf.mxu1 }
 0x7b5   : > { %4337 = vpow2.f32 %v3418_v28 }
 0x7c2   : > { %v4338_v48 = vpop.eup %4337 }
 0x7c3   : > { %v2672_v62 = vadd.f32 1.0, %v4338_v48 }
 0x7c5   : > { %4339 = vrcp.f32 %v2672_v62 }
 0x7d2   : > { %v4340_v39 = vpop.eup %4339 }
 0x7d3   : > { %v2678_v19 = vrot.slane %v4340_v39, %v5766_v63 }
 0x7d5   : > { %v2679_v14 = vmul.f32 %v2678_v19, %v5321_v24  ;;  %v2680_v12 = vmul.f32 %v2678_v19, %v5323_v27  ;;  %v2681_v52 = vmul.f32 %v2678_v19, %v5325_v29  ;;  %v2682_v37 = vmul.f32 %v2678_v19, %v5329_v34 }
 0x7d6   : > { %v2683_v6 = vmul.f32 %v2678_v19, %v5332_v17  ;;  %v2684_v45 = vmul.f32 %v2678_v19, %v5336_v32  ;;  %v2685_v24 = vmul.f32 %v2678_v19, %v5338_v4  ;;  %v2686_v27 = vmul.f32 %v2678_v19, %v5341_v7  ;;  %v2850_v32 = vld [vmem:[%s5703_s10 + $0x78] sm:$0xff]  ;;  %v2849_v4 = vld [vmem:[%s5703_s10 + $0x70] sm:$0xff]  ;;  %v2848_v7 = vld [vmem:[%s5703_s10 + $0x68] sm:$0xff] }
 0x7d7   : > { %v2687_v5 = vmax.f32 %v2679_v14, 0.0  ;;  %v2688_v50 = vmax.f32 %v2680_v12, 0.0  ;;  %v2689_v38 = vmax.f32 %v2681_v52, 0.0  ;;  %v2690_v59 = vmax.f32 %v2682_v37, 0.0  ;;  %4095 = vmatpush3.msra.mxu1 %v2850_v32  ;;  %v2858_v32 = vld [vmem:[%s5768_s18 + $0x28] sm:$0xff] }
 0x7d8   : > { %v2691_v51 = vmax.f32 %v2683_v6, 0.0  ;;  %v2692_v44 = vmax.f32 %v2684_v45, 0.0  ;;  %v2693_v34 = vmax.f32 %v2685_v24, 0.0  ;;  %v2694_v17 = vmax.f32 %v2686_v27, 0.0  ;;  %4096 = vmatprep.subr.mxu1 %v5765_v41  ;;  %v2852_v45 = vld [vmem:[%s5767_s21 + $0x8] sm:$0x3] }
 0x7d9   : > { %v2711_v1 = vpack.c.bf16 %v2688_v50, %v2687_v5  ;;  %v2712_v57 = vpack.c.bf16 %v2690_v59, %v2689_v38  ;;  %4097 = vmatpush3.msra.mxu1 %v2849_v4  ;;  %v2851_v5 = vld [vmem:[%s5767_s21] sm:$0xff]  ;;  %v2864_v24 = vld [vmem:[%s5768_s18 + $0x58] sm:$0xff]  ;;  %v2863_v27 = vld [vmem:[%s5768_s18 + $0x50] sm:$0xff] }
 0x7da   : > { %v2713_v29 = vpack.c.bf16 %v2692_v44, %v2691_v51  ;;  %v2714_v15 = vpack.c.bf16 %v2694_v17, %v2693_v34  ;;  %4098 = vmatprep.subr.mxu1 %v5765_v41  ;;  %v2868_v51 = vld [vmem:[%s5768_s18 + $0x78] sm:$0xff]  ;;  %v2867_v44 = vld [vmem:[%s5768_s18 + $0x70] sm:$0xff]  ;;  %v2861_v34 = vld [vmem:[%s5768_s18 + $0x40] sm:$0xff] }
 0x7db   : > { %4086 = vmatprep.mubr.bf16.mxu0 %v2711_v1  ;;  %4099 = vmatpush3.msra.mxu1 %v2848_v7  ;;  %v2866_v1 = vld [vmem:[%s5768_s18 + $0x68] sm:$0xff]  ;;  %v2860_v17 = vld [vmem:[%s5768_s18 + $0x38] sm:$0xff]  ;;  %v2857_v4 = vld [vmem:[%s5768_s18 + $0x20] sm:$0xff] }
 0x7dc   : > { %4087 = vmatmul.mubr.bf16.vlgmr.msra.gmra.mxu0 %v2712_v57  ;;  %4100 = vmatprep.subr.mxu1 %v5765_v41  ;;  %v2865_v57 = vld [vmem:[%s5768_s18 + $0x60] sm:$0xff]  ;;  %v2856_v7 = vld [vmem:[%s5768_s18 + $0x18] sm:$0xff] }
 0x7dd   : > { %4090 = vmatprep.mubr.bf16.mxu0 %v2713_v29  ;;  %4101 = vmatpush3.msra.mxu1 %v2847_v36  ;;  %v2862_v29 = vld [vmem:[%s5768_s18 + $0x48] sm:$0xff]  ;;  %v2855_v36 = vld [vmem:[%s5768_s18 + $0x10] sm:$0xff] }
 0x7de   : > { %4102 = vmatprep.subr.mxu1 %v5765_v41  ;;  %4137 = vmatpush3.msra.mxu0 %v2868_v51 }
 0x7df   : > { %4103 = vmatpush3.msra.mxu1 %v2846_v9  ;;  %4138 = vmatprep.subr.mxu0 %v5765_v41  ;;  %v2854_v9 = vld [vmem:[%s5768_s18 + $0x8] sm:$0xff] }
 0x7e0   : > { %4104 = vmatprep.subr.mxu1 %v5765_v41  ;;  %4139 = vmatpush3.msra.mxu0 %v2867_v44 }
 0x7e1   : > { %4105 = vmatpush3.msra.mxu1 %v2845_v13  ;;  %4140 = vmatprep.subr.mxu0 %v5765_v41  ;;  %v2853_v13 = vld [vmem:[%s5768_s18] sm:$0xff] }
 0x7e2   : > { %4106 = vmatprep.subr.mxu1 %v5765_v41  ;;  %4141 = vmatpush3.msra.mxu0 %v2866_v1 }
 0x7e3   : > { %4107 = vmatpush3.msra.mxu1 %v2844_v20  ;;  %4142 = vmatprep.subr.mxu0 %v5765_v41 }
 0x7e4   : > { %4091 = vmatmul.mubr.bf16.gmra.mxu0 %v2714_v15  ;;  %4108 = vmatprep.subr.mxu1 %v5765_v41  ;;  %v2859_v15 = vld [vmem:[%s5768_s18 + $0x30] sm:$0xff] }
 0x7e5   : > { %4168 = vmatprep.mubr.msk.f32.mxu0 %vm4504_vm0, %v5765_v41  ;;  %4109 = vmatpush3.msra.mxu1 %v2843_v47 }
 0x7e6   : > { %4110 = vmatprep.subr.mxu1 %v5765_v41  ;;  %4143 = vmatpush3.msra.mxu0 %v2865_v57 }
 0x7e7   : > { %4111 = vmatpush3.msra.mxu1 %v2842_v43  ;;  %4144 = vmatprep.subr.mxu0 %v5765_v41 }
 0x7e8   : > { %4112 = vmatprep.subr.mxu1 %v5765_v41  ;;  %4145 = vmatpush3.msra.mxu0 %v2864_v24 }
 0x7e9   : > { %4113 = vmatpush3.msra.mxu1 %v2841_v58  ;;  %4146 = vmatprep.subr.mxu0 %v5765_v41 }
 0x7ea   : > { %4114 = vmatprep.subr.mxu1 %v5765_v41  ;;  %4147 = vmatpush3.msra.mxu0 %v2863_v27 }
 0x7eb   : > { %4115 = vmatpush3.msra.mxu1 %v2840_v49  ;;  %4148 = vmatprep.subr.mxu0 %v5765_v41 }
 0x7ec   : > { %4116 = vmatprep.subr.mxu1 %v5765_v41  ;;  %4149 = vmatpush3.msra.mxu0 %v2862_v29 }
 0x7ed   : > { %4117 = vmatpush3.msra.mxu1 %v2839_v2  ;;  %4150 = vmatprep.subr.mxu0 %v5765_v41 }
 0x7ee   : > { %4118 = vmatprep.subr.mxu1 %v5765_v41  ;;  %4151 = vmatpush3.msra.mxu0 %v2861_v34 }
 0x7ef   : > { %4119 = vmatpush3.msra.mxu1 %v2838_v3  ;;  %4152 = vmatprep.subr.mxu0 %v5765_v41 }
 0x7f0   : > { %4120 = vmatprep.subr.mxu1 %v5765_v41  ;;  %4153 = vmatpush3.msra.mxu0 %v2860_v17 }
 0x7f1   : > { %4121 = vmatpush3.msra.mxu1 %v2837_v40  ;;  %4154 = vmatprep.subr.mxu0 %v5765_v41 }
 0x7f2   : > { %4122 = vmatprep.subr.mxu1 %v5765_v41  ;;  %4155 = vmatpush3.msra.mxu0 %v2859_v15 }
 0x7f3   : > { %4123 = vmatpush3.msra.mxu1 %v2836_v42  ;;  %4156 = vmatprep.subr.mxu0 %v5765_v41 }
 0x7f4   : > { %4124 = vmatprep.subr.mxu1 %v5765_v41  ;;  %4157 = vmatpush3.msra.mxu0 %v2858_v32 }
 0x7f5   : > { %4125 = vmatpush3.msra.mxu1 %v2835_v0  ;;  %4158 = vmatprep.subr.mxu0 %v5765_v41 }
 0x7f6   : > { %4129 = vmatprep.subr.mxu1 %v5765_v41  ;;  %4159 = vmatpush3.msra.mxu0 %v2857_v4 }
 0x7f7   : > { %4160 = vmatprep.subr.mxu0 %v5765_v41 }
 0x7f8   : > { %4161 = vmatpush3.msra.mxu0 %v2856_v7 }
 0x7f9   : > { %4162 = vmatprep.subr.mxu0 %v5765_v41 }
 0x7fa   : > { %4163 = vmatpush3.msra.mxu0 %v2855_v36 }
 0x7fb   : > { %4164 = vmatprep.subr.mxu0 %v5765_v41 }
 0x7fc   : > { %4165 = vmatpush3.msra.mxu0 %v2854_v9 }
 0x7fd   : > { %4166 = vmatprep.subr.mxu0 %v5765_v41 }
 0x7fe   : > { %4167 = vmatpush3.msra.mxu0 %v2853_v13 }
 0x89c   : > { %v4088_v55 = vpop.f32.mrf.mxu0 }
 0x89d   : > { %v5521_v8 = vadd.f32 %v4088_v55, %v3419_v53 }
 0x89e   : > { %v2804_v56 = vpop.f32.mrf.mxu0 }
 0x89f   : > { %v5517_v21 = vadd.f32 %v3419_v53, %v2804_v56 }
 0x8a0   : > { %v4089_v16 = vpop.f32.mrf.mxu0 }
 0x8a1   : > { %v5525_v60 = vadd.f32 %v4089_v16, %v3419_v53 }
 0x8a2   : > { %v2807_v11 = vpop.f32.mrf.mxu0 }
 0x8a3   : > { %v5519_v18 = vadd.f32 %v3419_v53, %v2807_v11 }
 0x8a4   : > { %v4092_v61 = vpop.f32.mrf.mxu0 }
 0x8a5   : > { %v2869_v10 = vadd.f32 %v5519_v18, %v5517_v21  ;;  %v5534_v35 = vadd.f32 %v4092_v61, %v3419_v53 }
 0x8a6   : > { %v2820_v22 = vpop.f32.mrf.mxu0 }
 0x8a7   : > { %v2870_v46 = vadd.f32 %v2869_v10, %v5521_v8  ;;  %v5528_v25 = vadd.f32 %v3419_v53, %v2820_v22 }
 0x8a8   : > { %v4093_v23 = vpop.f32.mrf.mxu0 }
 0x8a9   : > { %v2871_v31 = vadd.f32 %v2870_v46, %v5525_v60  ;;  %v5537_v33 = vadd.f32 %v4093_v23, %v3419_v53  ;;  %v4367_v23 = vld [vmem:[%s4701_s19 + $0x10] sm:$0xff] }
 0x8aa   : > { %v2823_v54 = vpop.f32.mrf.mxu0 }
 0x8ab   : > { %v2872_v26 = vadd.f32 %v2871_v31, %v5528_v25  ;;  %v5532_v30 = vadd.f32 %v3419_v53, %v2823_v54  ;;  %v4368_v31 = vld [vmem:[%s4701_s19 + $0x18] sm:$0xff] }
 0x8ad   : > { %v2873_v28 = vadd.f32 %v2872_v26, %v5532_v30  ;;  %v4369_v26 = vld [vmem:[%s4701_s19 + $0x20] sm:$0xff] }
 0x8af   : > { %v2874_v48 = vadd.f32 %v2873_v28, %v5534_v35 }
 0x8b1   : > { %v2875_v62 = vadd.f32 %v2874_v48, %v5537_v33 }
 0x8b3   : > { %v2876_v39 = vrot.slane %v2875_v62, 4 }
 0x8b5   : > { %v2877_v19 = vadd.f32 %v2876_v39, %v2875_v62  ;;  %v4372_v62 = vld [vmem:[%s4701_s19 + $0x38] sm:$0xff] }
 0x8b7   : > { %v2878_v14 = vrot.slane %v2877_v19, 2 }
 0x8b9   : > { %v2879_v12 = vadd.f32 %v2878_v14, %v2877_v19 }
 0x8bb   : > { %v2880_v52 = vrot.slane %v2879_v12, 1 }
 0x8bd   : > { %v2881_v37 = vadd.f32 %v2880_v52, %v2879_v12 }
 0x8bf   : > { %v2882_v6 = vmul.f32 0.015625, %v2881_v37 }
 0x8c1   : > { %4127 = vmatmul.mubr.f32.vlgmr.msra.gmra.mxu1 %v2882_v6 }
 0x8c2   : > { %4130 = vmatpush3.msk.msra.mxu1 %vm746_vm1, %v2852_v45  ;;  %4133 = vmatprep.mubr.msk.f32.mxu1 %vm4504_vm0, %v5765_v41 }
 0x8c3   : > { %4131 = vmatprep.subr.mxu1 %v5765_v41 }
 0x8c4   : > { %4132 = vmatpush3.msra.mxu1 %v2851_v5 }
 0x981   : > { %v2949_v50 = vpop.f32.mrf.mxu1 }
 0x982   : > { %v2953_v38 = vmax.f32 %v2949_v50, 0.0 }
 0x983   : > { %v4128_v59 = vpop.f32.mrf.mxu1 }
 0x984   : > { %4134 = vmatmul.mubr.msk.f32.vlgmr.msra.gmra.mxu1 %vm2954_vm14, %v2953_v38 }
 0xa44   : > { %v3027_v20 = vpop.f32.mrf.mxu1 }
 0xa45   : > { %v3430_v47 = vmul.f32 -1.442695, %v3027_v20 }
 0xa46   : > { %v4135_v43 = vpop.f32.mrf.mxu1 }
 0xa47   : > { %4341 = vpow2.f32 %v3430_v47 }
 0xa54   : > { %v4342_v58 = vpop.eup %4341 }
 0xa55   : > { %v3034_v49 = vadd.f32 1.0, %v4342_v58 }
 0xa57   : > { %4343 = vrcp.f32 %v3034_v49 }
 0xa64   : > { %v4344_v2 = vpop.eup %4343 }
 0xa65   : > { %4169 = vmatmul.mubr.f32.vlgmr.msra.gmra.mxu0 %v4344_v2 }
 0xb25   : > { %v3103_v3 = vpop.f32.mrf.mxu0 }
 0xb26   : > { %v3431_v40 = vmul.f32 -1.442695, %v3103_v3 }
 0xb27   : > { %v4170_v42 = vpop.f32.mrf.mxu0 }
 0xb28   : > { %4345 = vpow2.f32 %v3431_v40 }
 0xb35   : > { %v4346_v0 = vpop.eup %4345 }
 0xb36   : > { %v3110_v55 = vadd.f32 1.0, %v4346_v0 }
 0xb38   : > { %4347 = vrcp.f32 %v3110_v55 }
 0xb45   : > { %v4348_v41 = vpop.eup %4347 }
 0xb46   : > { %v3116_v56 = vrot.slane %v4348_v41, %v5766_v63 }
 0xb48   : > { %v3117_v16 = vmul.f32 %v3116_v56, %v5517_v21  ;;  %v3118_v53 = vmul.f32 %v3116_v56, %v5519_v18  ;;  %v3119_v11 = vmul.f32 %v3116_v56, %v5521_v8  ;;  %v3120_v61 = vmul.f32 %v3116_v56, %v5525_v60  ;;  %v4365_v21 = vld [vmem:[%s4701_s19] sm:$0xff]  ;;  %v4366_v8 = vld [vmem:[%s4701_s19 + $0x8] sm:$0xff] }
 0xb49   : > { %v3121_v10 = vmul.f32 %v3116_v56, %v5528_v25  ;;  %v3122_v22 = vmul.f32 %v3116_v56, %v5532_v30  ;;  %v3123_v46 = vmul.f32 %v3116_v56, %v5534_v35  ;;  %v3124_v63 = vmul.f32 %v3116_v56, %v5537_v33  ;;  %v4370_v35 = vld [vmem:[%s4701_s19 + $0x28] sm:$0xff]  ;;  %v4371_v33 = vld [vmem:[%s4701_s19 + $0x30] sm:$0xff]  ;;  %s3150_s19 = scalar_lea.sflag [#allocation4], %s4695_s12 }
 0xb4a   : > { %v3125_v18 = vadd.f32 %v4365_v21, %v3117_v16  ;;  %v3126_v60 = vadd.f32 %v4366_v8, %v3118_v53  ;;  %v3127_v25 = vadd.f32 %v4367_v23, %v3119_v11  ;;  %v3128_v54 = vadd.f32 %v4368_v31, %v3120_v61 }
 0xb4b   : > { %v3129_v30 = vadd.f32 %v4369_v26, %v3121_v10  ;;  %v3130_v28 = vadd.f32 %v4370_v35, %v3122_v22  ;;  %v3131_v48 = vadd.f32 %v4371_v33, %v3123_v46  ;;  %v3132_v39 = vadd.f32 %v4372_v62, %v3124_v63 }
 0xb4c   : > { %v3133_v19 = vmax.f32 %v3125_v18, 0.0  ;;  %v3134_v14 = vmax.f32 %v3126_v60, 0.0  ;;  %v3135_v12 = vmax.f32 %v3127_v25, 0.0  ;;  %v3136_v52 = vmax.f32 %v3128_v54, 0.0 }
 0xb4d   : > { %v3137_v37 = vmax.f32 %v3129_v30, 0.0  ;;  %v3138_v6 = vmax.f32 %v3130_v28, 0.0  ;;  %v3139_v45 = vmax.f32 %v3131_v48, 0.0  ;;  %v3140_v5 = vmax.f32 %v3132_v39, 0.0 }
 0xb4e   : > { %3141 = vst [vmem:[%s5626_s30] sm:$0xff] %v3133_v19  ;;  %3142 = vst [vmem:[%s5626_s30 + $0x8] sm:$0xff] %v3134_v14 }
 0xb4f   : > { %3143 = vst [vmem:[%s5626_s30 + $0x10] sm:$0xff] %v3135_v12  ;;  %3144 = vst [vmem:[%s5626_s30 + $0x18] sm:$0xff] %v3136_v52 }
 0xb50   : > { %3145 = vst [vmem:[%s5626_s30 + $0x20] sm:$0xff] %v3137_v37  ;;  %3146 = vst [vmem:[%s5626_s30 + $0x28] sm:$0xff] %v3138_v6 }
 0xb51   : > { %3147 = vst [vmem:[%s5626_s30 + $0x30] sm:$0xff] %v3139_v45  ;;  %3148 = vst [vmem:[%s5626_s30 + $0x38] sm:$0xff] %v3140_v5 }
 0xb52   : > { %4440 = shalt.err (!%p4437_p0)
}
 0xb53   : > { %s4441_s25 = scalar_lea.hbm %s5640_s16, 1024  ;;  %s4445_s29 = scalar_lea.hbm %s5769_s17, 2048 }
 0xb54   : > { %p4442_p5 = scmp.ne.s32.totalorder %s5640_s16, %s4441_s25  ;;  %p4446_p4 = scmp.lt.s32.totalorder %s5640_s16, %s5769_s17 }
 0xb55   : > { %p4447_p6 = scmp.lt.s32.totalorder %s4445_s29, %s4441_s25 }
 0xb56   : > { %p4443_p9 = pnand %p4442_p5, %p5770_p11 }
 0xb57   : > { %p4448_p8 = por %p4447_p6, %p4446_p4 }
 0xb58   : > { %p4444_p1 = pneg %p4443_p9 }
 0xb5a   : > { %p4449_p3 = pnand %p4448_p8, %p4444_p1 }
 0xb5c   : > { %4452 = shalt.err (!%p4449_p3)
}
 0xb5d   : > { %s4507_s20 = smov 128   ;;  %s4508_s14 = smov 8  }
 0xb5e   : > { %4177 = dma.vmem_to_hbm [thread:$0]  (%p5770_p11), %s5642_s13, 1024, %s5640_s16, %s3150_s19, %s4507_s20, %s4507_s20, %s4508_s14  }
 0xb5f PF: > { %s5771_s24 = sld [smem:[#allocation11_spill]]  ;;  %p5774_p12 = scmp.ge.s32.totalorder %s4495_s28, 2 }
 0xb60   : > { %s5772_s11 = sld [smem:[#allocation12_spill]] }
 0xb65   : > { %s3178_s30 = sand.u32 1, %s5771_s24  }
 0xb66   : > { %p5773_p7 = scmp.ne.s32.totalorder %s5772_s11, 0  ;;  %s3179_s25 = scalar_lea.sflag [#allocation4], %s3178_s30 }
 0xb68   : > { %p4188_p10 = pnand %p5774_p12, %p5773_p7 }
 0xb6a   : > { %p4189_p2 = pneg %p4188_p10 }
 0xb6c   : > { %4478 = dma.done.wait (%p4189_p2), %s3179_s25, 1024  }
 0xb6d   : > { %4480 = vsyncadd (%p4189_p2), %s3179_s25, 4294966272  ;;  %s5775_s28 = sld [smem:[#allocation13_spill]]  ;;  %s5776_s25 = smov %s4487_s26 }
 0xb6e   : > { %s5777_s26 = smov %s4491_s27  ;;  %s5778_s27 = smov %s4650_s23 }
 0xb73   : > { %p27_p13 = scmp.ge.s32.totalorder %s5775_s28, 4  }
 0xb75   :  { %29 = sbr.rel (!%p27_p13) target bundleno = 11 (0xb), region = 129 }
 0xb7a   :  { %3184 = vsyncpa [#allocation3], 1 }
 0xb7b   :  { %3186 = vsyncpa [#allocation3 + $0x1], 1 }
 0xb7c   :  { %3187 = vsyncpa [#allocation6], 1 }
 0xb7d   :  { %3188 = vsyncpa [#allocation4], 1 }
 0xb7e   :  { %3190 = vsyncpa [#allocation4 + $0x1], 1 }

</bundles_post_ra>
